<compile_context>
chip_gen: v6e
topology: v6e:2x2x1
jax: 0.10.0
libtpu: 0.0.40
codegen_flags: <defaults>
</compile_context>

<pallas_src>
import jax
import jax.numpy as jnp
from jax.experimental import pallas as pl
from jax.experimental.pallas import tpu as pltpu


def make_dynamic_attention_kernel(Bb, S, D, Dt, Tq):
    """Bb batch elems per block, S tokens, D in-dim, Dt value-dim, Tq query rows kept."""
    N = 2 * D + Dt

    def kernel(x_ref, w_ref, b_ref, out_ref):
        # ---- fused Q|K|V projection, batch folded into the MXU M dimension ----
        x_bf = x_ref[...].astype(jnp.bfloat16).reshape(Bb * S, D)        # (Bb*S, D) bf16
        qkv = jnp.dot(x_bf, w_ref[...],                                   # w_ref is bf16
                      preferred_element_type=jnp.float32) + b_ref[...]    # (Bb*S, 2D+Dt) f32

        # Lane slices at multiples of 128 -> whole-vreg selects, free.
        q_full = qkv[:, :D].reshape(Bb, S, D)
        k      = qkv[:, D:2 * D].reshape(Bb, S, D)
        v      = qkv[:, 2 * D:N].reshape(Bb, S, Dt)

        # Only the first Tq query rows contribute to the output (Tq % 8 == 0 so this is
        # a tile-aligned slice, no relayout copy).
        q = q_full[:, :Tq, :]                                              # (Bb, Tq, D)

        # ---- attention: batched contraction over the Bb block-batch dim ----
        # Unscaled scores, exactly like the PyTorch module (no 1/sqrt(d)).
        s = jnp.einsum("bqd,bkd->bqk",
                       q.astype(jnp.bfloat16), k.astype(jnp.bfloat16),
                       preferred_element_type=jnp.float32)                 # (Bb, Tq, S) f32

        s = s - jnp.max(s, axis=-1, keepdims=True)
        p = jnp.exp(s)
        row_sum = jnp.sum(p, axis=-1, keepdims=True)                       # (Bb, Tq, 1)
        inv = pl.reciprocal(row_sum, approx=True)      # EUP slot
        inv = inv * (2.0 - row_sum * inv)              # one Newton step (tiny VALU cost)
        p = p * inv

        ctx = jnp.einsum("bqk,bkd->bqd",
                         p.astype(jnp.bfloat16), v.astype(jnp.bfloat16),
                         preferred_element_type=jnp.float32)                # (Bb, Tq, Dt)

        out_ref[...] = ctx.astype(out_ref.dtype)

    return kernel


def _pick_block_batch(B, S):
    """Largest Bb dividing B with grid = B/Bb >= 4 and M = Bb*S <= 1024; relax the grid
    constraint to 2 if needed to reach M >= 256 (fills v6e/v7x MXU rows)."""
    divisors = [d for d in range(1, B + 1) if B % d == 0]
    best = 1
    for d in divisors:
        if B // d >= 4 and d * S <= 1024:
            best = d
    if best * S < 256:
        for d in divisors:
            if B // d >= 2 and 256 <= d * S <= 1024:
                best = d
                break
    return best


def dynamic_attention_forward(x, params, target_length, block_batch=None,
                              out_dtype=jnp.float32):
    B, S, D = x.shape
    Dt = params["v_w"].shape[1]
    N = 2 * D + Dt

    # Query rows actually needed, rounded up to a sublane multiple for aligned compute.
    Tq = min(S, ((int(target_length) + 7) // 8) * 8)

    Bb = block_batch if block_batch is not None else _pick_block_batch(B, S)
    assert B % Bb == 0, "block_batch must divide B"

    # Pack Q|K|V weights into one (D, 2D+Dt) bf16 matrix (single wide-N projection,
    # halves weight DMA).  Biases stay f32 and are added to the f32 accumulator.
    w_qkv = jnp.concatenate(
        [params["q_w"], params["k_w"], params["v_w"]], axis=1).astype(jnp.bfloat16)
    b_qkv = jnp.concatenate(
        [params["q_b"], params["k_b"], params["v_b"]], axis=1).astype(jnp.float32)

    kernel = make_dynamic_attention_kernel(Bb, S, D, Dt, Tq)

    cost = pl.CostEstimate(
        flops=2 * B * S * D * N + 2 * B * Tq * S * (D + Dt),
        transcendentals=B * Tq * S,
        bytes_accessed=(x.size * x.dtype.itemsize
                        + w_qkv.size * 2 + b_qkv.size * 4
                        + B * Tq * Dt * jnp.dtype(out_dtype).itemsize),
    )

    out = pl.pallas_call(
        kernel,
        out_shape=jax.ShapeDtypeStruct((B, Tq, Dt), out_dtype),
        grid=(B // Bb,),
        in_specs=[
            pl.BlockSpec((Bb, S, D), lambda b: (b, 0, 0)),   # x block (streams per step)
            pl.BlockSpec((D, N), lambda b: (0, 0)),          # fused W_qkv (resident)
            pl.BlockSpec((1, N), lambda b: (0, 0)),          # fused bias (resident)
        ],
        out_specs=pl.BlockSpec((Bb, Tq, Dt), lambda b: (b, 0, 0)),
        compiler_params=pltpu.CompilerParams(dimension_semantics=("parallel",)),
        cost_estimate=cost,
    )(x, w_qkv, b_qkv)

    # Final trim to the exact target_length (done in the wrapper; free).
    return out[:, :target_length, :]


# --------------------- pure-JAX reference (for verification) ---------------------
def dynamic_attention_reference(x, p, target_length):
    q = x @ p["q_w"] + p["q_b"][0]
    k = x @ p["k_w"] + p["k_b"][0]
    v = x @ p["v_w"] + p["v_b"][0]
    s = jnp.einsum("bqd,bkd->bqk", q, k)          # no 1/sqrt(d) scale, per the module
    a = jax.nn.softmax(s, axis=-1)
    ctx = jnp.einsum("bqk,bkd->bqd", a, v)
    return ctx[:, :target_length, :]


def init_params(key, D, Dt):
    ks = jax.random.split(key, 6)
    std = 0.05
    return {
        # stored as (in, out) == PyTorch Linear weight transposed, so y = x @ W + b
        "q_w": std * jax.random.normal(ks[0], (D, D), jnp.float32),
        "q_b": std * jax.random.normal(ks[1], (1, D), jnp.float32),
        "k_w": std * jax.random.normal(ks[2], (D, D), jnp.float32),
        "k_b": std * jax.random.normal(ks[3], (1, D), jnp.float32),
        "v_w": std * jax.random.normal(ks[4], (D, Dt), jnp.float32),
        "v_b": std * jax.random.normal(ks[5], (1, Dt), jnp.float32),
    }


if __name__ == "__main__":
    # Small but lane-aligned shapes.  B=16 so the default Bb=4 gives a folded MXU
    # M = Bb*S = 256 and grid = 4 (>= 2 steps per v7x TensorCore).
    B, S, D, Dt = 16, 64, 128, 128
    target_length = 40            # deliberately not a multiple of 8

    root = jax.random.PRNGKey(0)
    kx, kp = jax.random.split(root)
    x = 0.5 * jax.random.normal(kx, (B, S, D), jnp.float32)
    params = init_params(kp, D, Dt)

    out = jax.block_until_ready(dynamic_attention_forward(x, params, target_length))
    ref = jax.block_until_ready(dynamic_attention_reference(x, params, target_length))

    assert out.shape == (B, target_length, Dt)
    max_err = jnp.max(jnp.abs(out - ref))
    # bf16 MXU operands (x, W, Q, K, P, V) with f32 accumulation: loosen tolerance
    # accordingly; observed error is well inside this bound.
    assert jnp.allclose(out, ref, atol=2e-2, rtol=2e-2), f"max abs err {max_err}"

    print("KERNEL_OK")
</pallas_src>

<mosaic_0001>
module attributes {stable_mosaic.version = 11 : i64} {
  func.func @kernel(%arg0: i32, %arg1: memref<4x64x128xf32, #tpu.memory_space<vmem>>, %arg2: memref<128x384xbf16, #tpu.memory_space<vmem>>, %arg3: memref<1x384xf32, #tpu.memory_space<vmem>>, %arg4: memref<4x40x128xf32, #tpu.memory_space<vmem>>) attributes {dimension_semantics = [#tpu.dimension_semantics<parallel>], iteration_bounds = array<i64: 4>, scalar_prefetch = 0 : i64, scratch_operands = 0 : i64, tpu.core_type = #tpu.core_type<tc>, window_params = [{transform_indices = @transform_0, window_bounds = array<i64: 4, 64, 128>}, {pipeline_mode = #tpu.pipeline_mode<synchronous>, transform_indices = @transform_1, window_bounds = array<i64: 128, 384>}, {pipeline_mode = #tpu.pipeline_mode<synchronous>, transform_indices = @transform_2, window_bounds = array<i64: 1, 384>}, {transform_indices = @transform_3, window_bounds = array<i64: 4, 40, 128>}]} {
    %c0 = arith.constant 0 : index
    %c0_0 = arith.constant 0 : index
    %c0_1 = arith.constant 0 : index
    %0 = vector.load %arg1[%c0, %c0_0, %c0_1] : memref<4x64x128xf32, #tpu.memory_space<vmem>>, vector<4x64x128xf32>
    %1 = arith.truncf %0 : vector<4x64x128xf32> to vector<4x64x128xbf16>
    %2 = vector.shape_cast %1 : vector<4x64x128xbf16> to vector<256x128xbf16>
    %c0_2 = arith.constant 0 : index
    %c0_3 = arith.constant 0 : index
    %3 = vector.load %arg2[%c0_2, %c0_3] : memref<128x384xbf16, #tpu.memory_space<vmem>>, vector<128x384xbf16>
    %cst = arith.constant dense<0.000000e+00> : vector<256x384xf32>
    %4 = tpu.matmul %2, %3, %cst {dimension_numbers = #tpu.dot_dimension_numbers<[1], [0], [0], [1], [0, 0, 1, 1], [], []>} : vector<256x128xbf16>, vector<128x384xbf16>, vector<256x384xf32> -> vector<256x384xf32>
    %c0_4 = arith.constant 0 : index
    %c0_5 = arith.constant 0 : index
    %5 = vector.load %arg3[%c0_4, %c0_5] : memref<1x384xf32, #tpu.memory_space<vmem>>, vector<1x384xf32>
    %6 = vector.broadcast %5 : vector<1x384xf32> to vector<256x384xf32>
    %7 = arith.addf %4, %6 : vector<256x384xf32>
    %8 = vector.extract_strided_slice %7 {offsets = [0, 0], sizes = [256, 128], strides = [1, 1]} : vector<256x384xf32> to vector<256x128xf32>
    %9 = vector.shape_cast %8 : vector<256x128xf32> to vector<4x64x128xf32>
    %10 = vector.extract_strided_slice %7 {offsets = [0, 128], sizes = [256, 128], strides = [1, 1]} : vector<256x384xf32> to vector<256x128xf32>
    %11 = vector.shape_cast %10 : vector<256x128xf32> to vector<4x64x128xf32>
    %12 = vector.extract_strided_slice %7 {offsets = [0, 256], sizes = [256, 128], strides = [1, 1]} : vector<256x384xf32> to vector<256x128xf32>
    %13 = vector.shape_cast %12 : vector<256x128xf32> to vector<4x64x128xf32>
    %14 = vector.extract_strided_slice %9 {offsets = [0, 0, 0], sizes = [4, 40, 128], strides = [1, 1, 1]} : vector<4x64x128xf32> to vector<4x40x128xf32>
    %15 = arith.truncf %14 : vector<4x40x128xf32> to vector<4x40x128xbf16>
    %16 = arith.truncf %11 : vector<4x64x128xf32> to vector<4x64x128xbf16>
    "tpu.trace_start"() <{level = 10 : i32, message = "bqd,bkd->bqk"}> : () -> ()
    %cst_6 = arith.constant dense<0.000000e+00> : vector<4x40x64xf32>
    %17 = tpu.matmul %15, %16, %cst_6 {dimension_numbers = #tpu.dot_dimension_numbers<[2], [2], [1], [1], [0, 0, 0, 1, 1, 1], [0], [0]>} : vector<4x40x128xbf16>, vector<4x64x128xbf16>, vector<4x40x64xf32> -> vector<4x40x64xf32>
    "tpu.trace_stop"() : () -> ()
    %cst_7 = arith.constant dense<0xFF800000> : vector<4x40xf32>
    %18 = vector.multi_reduction <maximumf>, %17, %cst_7 [2] : vector<4x40x64xf32> to vector<4x40xf32>
    %19 = vector.shape_cast %18 : vector<4x40xf32> to vector<4x40x1xf32>
    %20 = vector.broadcast %19 : vector<4x40x1xf32> to vector<4x40x64xf32>
    %21 = arith.subf %17, %20 : vector<4x40x64xf32>
    %22 = math.exp %21 : vector<4x40x64xf32>
    %cst_8 = arith.constant dense<0.000000e+00> : vector<4x40xf32>
    %23 = vector.multi_reduction <add>, %22, %cst_8 [2] : vector<4x40x64xf32> to vector<4x40xf32>
    %24 = vector.shape_cast %23 : vector<4x40xf32> to vector<4x40x1xf32>
    %25 = tpu.reciprocal %24 {approx = true} : vector<4x40x1xf32> -> vector<4x40x1xf32>
    %26 = arith.mulf %24, %25 : vector<4x40x1xf32>
    %cst_9 = arith.constant 2.000000e+00 : f32
    %27 = vector.broadcast %cst_9 : f32 to vector<4x40x1xf32>
    %28 = arith.subf %27, %26 : vector<4x40x1xf32>
    %29 = arith.mulf %25, %28 : vector<4x40x1xf32>
    %30 = vector.broadcast %29 : vector<4x40x1xf32> to vector<4x40x64xf32>
    %31 = arith.mulf %22, %30 : vector<4x40x64xf32>
    %32 = arith.truncf %31 : vector<4x40x64xf32> to vector<4x40x64xbf16>
    %33 = arith.truncf %13 : vector<4x64x128xf32> to vector<4x64x128xbf16>
    "tpu.trace_start"() <{level = 10 : i32, message = "bqk,bkd->bqd"}> : () -> ()
    %cst_10 = arith.constant dense<0.000000e+00> : vector<4x40x128xf32>
    %34 = tpu.matmul %32, %33, %cst_10 {dimension_numbers = #tpu.dot_dimension_numbers<[2], [1], [1], [2], [0, 0, 0, 1, 1, 2], [0], [0]>} : vector<4x40x64xbf16>, vector<4x64x128xbf16>, vector<4x40x128xf32> -> vector<4x40x128xf32>
    "tpu.trace_stop"() : () -> ()
    %c0_11 = arith.constant 0 : index
    %c0_12 = arith.constant 0 : index
    %c0_13 = arith.constant 0 : index
    %35 = vector.load %arg4[%c0_11, %c0_12, %c0_13] : memref<4x40x128xf32, #tpu.memory_space<vmem>>, vector<4x40x128xf32>
    tpu.vector_store %arg4[%c0_11, %c0_12, %c0_13], %34 {strides = array<i32>} : memref<4x40x128xf32, #tpu.memory_space<vmem>>, vector<4x40x128xf32>,
    return
  }
  func.func @transform_0(%arg0: i32) -> (i32, i32, i32) {
    %c0_i32 = arith.constant 0 : i32
    %c0_i32_0 = arith.constant 0 : i32
    %c0_i32_1 = arith.constant 0 : i32
    return %arg0, %c0_i32, %c0_i32_0 : i32, i32, i32
  }
  func.func @transform_1(%arg0: i32) -> (i32, i32) {
    %c0_i32 = arith.constant 0 : i32
    %c0_i32_0 = arith.constant 0 : i32
    %c0_i32_1 = arith.constant 0 : i32
    return %c0_i32, %c0_i32_0 : i32, i32
  }
  func.func @transform_2(%arg0: i32) -> (i32, i32) {
    %c0_i32 = arith.constant 0 : i32
    %c0_i32_0 = arith.constant 0 : i32
    %c0_i32_1 = arith.constant 0 : i32
    return %c0_i32, %c0_i32_0 : i32, i32
  }
  func.func @transform_3(%arg0: i32) -> (i32, i32, i32) {
    %c0_i32 = arith.constant 0 : i32
    %c0_i32_0 = arith.constant 0 : i32
    %c0_i32_1 = arith.constant 0 : i32
    return %arg0, %c0_i32, %c0_i32_0 : i32, i32, i32
  }
}

</mosaic_0001>

<bundles_post_ra>
// kernel: tpu_custom_call.1
= control target key start
LH: loop header
LB: loop body
LE: loop exit
PB: predicated region body
PF: predicated region fallthrough
CT: control target
= control target key end

     0   :  { %8 = vsyncpa [#allocation3], 0  ;;  %s3246_s0 = inlined_call_operand.hbm [shape: f32[16,64,128], index: 0, kind: input, shape index: {}]   ;;  %s3247_s1 = inlined_call_operand.hbm [shape: bf16[128,384], index: 1, kind: input, shape index: {}]   ;;  %s3248_s2 = inlined_call_operand.vmem [shape: f32[1,384], index: 2, kind: input, shape index: {}]   ;;  %s3249_s3 = inlined_call_operand.hbm [shape: f32[16,40,128], index: 3, kind: output, shape index: {}]  }
   0x1   :  { %10 = vsyncpa [#allocation3 + $0x1], 0 }
   0x2   :  { %11 = vsyncpa [#allocation6], 0 }
   0x3   :  { %12 = vsyncpa [#allocation4], 0 }
   0x4   :  { %14 = vsyncpa [#allocation4 + $0x1], 0  ;;  %s2392_s12 = smov 0   ;;  %s2394_s13 = smov 0  }
   0x5   :  { %s2396_s14 = smov 0   ;;  %s2398_s15 = smov 0  }
   0x6 LB: > { %s2413_s16 = sadd.s32 4294967295, %s2358_s15   ;;  %s1714_s17 = sadd.s32 4294967294, %s2358_s15   ;;  %s2358_s15 = sphi %s2398_s15, %s3277_s15   ;;  %s2354_s14 = sphi %s2396_s14, %s3276_s14   ;;  %s2350_s13 = sphi %s2394_s13, %s3275_s13   ;;  %s2346_s12 = sphi %s2392_s12, %s3274_s12  }
   0x7   : > { %p40_p0 = scmp.ne.s32.totalorder %s2350_s13, %s2346_s12  ;;  %p3250_p1 = scmp.eq.s32.totalorder %s2413_s16, 0 }
   0x8   : > { %p112_p3 = scmp.eq.s32.totalorder %s1714_s17, 3  ;;  %p1715_p5 = scmp.ge.s32.totalorder %s2358_s15, 1 }
   0x9   : > { %p2422_p4 = por %p3250_p1, %p40_p0  ;;  %p119_p7 = scmp.lt.s32.totalorder %s2358_s15, 5 }
   0xa   : > { %p2427_p6 = por %p112_p3, %p40_p0  ;;  %s2360_s21 = smov [#allocation5]  }
   0xb   : > { %s3254_s18 = scalar_select %p2422_p4, 1, 0 }
   0xc   : > { %s3255_s19 = scalar_select %p2427_p6, 1, 0 }
   0xd   : > { %p2432_p8 = pnand %p1715_p5, %p119_p7  ;;  %s131_s22 = sshll.u32 %s2360_s21, 4  ;;  %s132_s22 = int_to_ptr.vmem [resolvable:$true] %s131_s22 }
   0xe   : > { %s2445_s24 = sadd.s32 1, %s2358_s15   ;;  %s27_s25 = sadd.s32 1, %s2354_s14 }
   0xf   : > { %s3256_s20 = scalar_select %p2432_p8, 1, 0 }
  0x10   : > { %p2066_p9 = pneg %p2432_p8  ;;  %s24_s26 = ssub.s32 %s2358_s15, %s2445_s24 }
  0x11   : > { %s2247_s27 = scalar_lea.vmem %s132_s22, 3072  ;;  %p2255_p3 = scmp.lt.s32.totalorder %s132_s22, %s132_s22 }
  0x12   : > { %p2440_p10 = pnand %p2066_p9, %p3250_p1  ;;  %p2248_p12 = scmp.ne.s32.totalorder %s132_s22, %s2247_s27 }
  0x13   : > { %p2256_p5 = scmp.lt.s32.totalorder %s2247_s27, %s2247_s27 }
  0x14   : > { %p2238_p11 = pneg %p2440_p10 }
  0x15   : > { %p2257_p7 = por %p2256_p5, %p2255_p3 }
  0x16   : > { %p2250_p13 = pnand %p2248_p12, %p2238_p11 }
  0x18   : > { %p2251_p0 = pneg %p2250_p13 }
  0x1a   : > { %p2258_p2 = pnand %p2257_p7, %p2251_p0 }
  0x1c   : > { %2261 = shalt.err (!%p2258_p2)
}
  0x1d   : > { %s2361_s28 = smov 192   ;;  %s2362_s29 = smov 12  }
  0x1e   : > { %2069 = dma.hbm_to_vmem [thread:$0]  (!%p2440_p10), %s3247_s1, 3072, %s132_s22, [#allocation6], %s2361_s28, %s2361_s28, %s2362_s29  }
  0x1f   : > { %p25_p9 = scmp.eq.s32.totalorder %s24_s26, 0  ;;  %p34_p11 = scmp.ne.s32.totalorder %s2354_s14, %s2350_s13 }
  0x20   : > { %p35_p12 = scmp.eq.s32.totalorder %s2358_s15, 0  ;;  %p2079_p2 = scmp.lt.s32.totalorder %s2358_s15, 4 }
  0x21   : > { %s2462_s5 = scalar_select %p25_p9, %s2354_s14, %s27_s25  }
  0x22   : > { %p36_p13 = por %p35_p12, %p34_p11  ;;  %p3258_p0 = scmp.eq.s32.totalorder %s2413_s16, 3 }
  0x23   : > { %s148_s7 = sand.u32 1, %s2354_s14   ;;  %s1767_s8 = sshll.u32 %s2358_s15, 12 }
  0x24   : > { %p2466_p3 = por %p3258_p0, %p34_p11  ;;  %s1718_s9 = sshll.u32 %s148_s7, 8 }
  0x25   : > { %s2475_s17 = scalar_lea.hbm %s3246_s0, %s1767_s8  ;;  %s152_s21 = scalar_lea.vmem [#allocation2], %s1718_s9 }
  0x26   : > { %s3259_s6 = scalar_select %p2466_p3, 1, 0 }
  0x27   : > { %s160_s22 = sshll.u32 %s152_s21, 4  ;;  %p2477_p10 = pnand %p2079_p2, %p36_p13  ;;  %s2481_s22 = int_to_ptr.vmem [resolvable:$true] %s160_s22 }
  0x28   : > { %s2483_s25 = scalar_lea.sflag [#allocation3], %s148_s7  ;;  %s2262_s26 = scalar_lea.hbm %s2475_s17, 4096 }
  0x29   : > { %p2263_p5 = scmp.ne.s32.totalorder %s2475_s17, %s2262_s26  ;;  %p2264_p7 = pneg %p2477_p10 }
  0x2a   : > { %s2267_s29 = scalar_lea.hbm %s3246_s0, 16384  ;;  %p2268_p12 = scmp.lt.s32.totalorder %s2475_s17, %s3246_s0 }
  0x2b   : > { %p2265_p9 = pnand %p2264_p7, %p2263_p5  ;;  %p2269_p2 = scmp.lt.s32.totalorder %s2267_s29, %s2262_s26 }
  0x2d   : > { %p2266_p11 = pneg %p2265_p9  ;;  %p2270_p13 = por %p2269_p2, %p2268_p12 }
  0x2f   : > { %p2271_p0 = pnand %p2270_p13, %p2266_p11 }
  0x31   : > { %2274 = shalt.err (!%p2271_p0)
}
  0x32   : > { %s2275_s7 = scalar_lea.vmem %s2481_s22, 4096  ;;  %s2363_s8 = smov [#allocation2]  }
  0x33   : > { %p2276_p1 = scmp.ne.s32.totalorder %s2481_s22, %s2275_s7  ;;  %s2280_s9 = sshll.u32 %s2363_s8, 4  ;;  %s2281_s9 = int_to_ptr.vmem [resolvable:$false] %s2280_s9 }
  0x34   : > { %s2282_s10 = scalar_lea.vmem %s2281_s9, 8192  ;;  %p2283_p9 = scmp.lt.s32.totalorder %s2481_s22, %s2281_s9 }
  0x35   : > { %p2278_p6 = pnand %p2276_p1, %p2264_p7  ;;  %p2284_p3 = scmp.lt.s32.totalorder %s2282_s10, %s2275_s7 }
  0x37   : > { %p2279_p5 = pneg %p2278_p6  ;;  %p2285_p4 = por %p2284_p3, %p2283_p9 }
  0x39   : > { %p2286_p8 = pnand %p2285_p4, %p2279_p5 }
  0x3b   : > { %2289 = shalt.err (!%p2286_p8)
}
  0x3c   : > { %s2364_s11 = smov 128   ;;  %s2365_s21 = smov 8  }
  0x3d   : > { %2073 = dma.hbm_to_vmem [thread:$0]  (!%p2477_p10), %s2475_s17, 4096, %s2481_s22, %s2483_s25, %s2364_s11, %s2364_s11, %s2365_s21  }
  0x3e   : > { %p3261_p1 = scmp.ne.s32.totalorder %s3256_s20, 0 }
  0x3f   : > { %s2507_s26 = sand.u32 (!%p3261_p1), 1, %s2350_s13   ;;  %p3262_p4 = scmp.ne.s32.totalorder (!%p3261_p1), %s3254_s18, 0 }
  0x40   : > { %172 = sbr.rel (%p3261_p1) target bundleno = 1204 (0x4b4), region = 32  ;;  %s1723_s27 = sshll.u32 (!%p3261_p1), %s2507_s26, 8 }
  0x41   : > { %s175_s28 = scalar_lea.sflag (!%p3261_p1), [#allocation3], %s2507_s26  ;;  %s2511_s29 = scalar_lea.vmem (!%p3261_p1), [#allocation2], %s1723_s27 }
  0x45   : > { %2333 = dma.done.wait (%p3262_p4), %s175_s28, 4096  }
  0x46   : > { %2335 = vsyncadd (%p3262_p4), %s175_s28, 4294963200  ;;  %p3263_p6 = scmp.eq.s32.totalorder %s2413_s16, 0 }
  0x48   : > { %2337 = dma.done.wait (%p3263_p6), [#allocation6], 3072   ;;  %p3264_p8 = pmov %p3263_p6 }
  0x49   : > { %v2366_v0 = vmov 0   ;;  %v2124_v1 = vld [vmem:[#allocation5 + $0xac] ss:$12 sps:$4 sm:$0xff]   ;;  %v2126_v2 = vld [vmem:[#allocation5 + $0xa8] ss:$12 sps:$4 sm:$0xff]   ;;  %v208_v8 = vld [vmem:[%s2511_s29] sm:$0xff] }
  0x4a   : > { %2339 = vsyncadd (%p3264_p8), [#allocation6], 4294964224  ;;  %465 = vmatprep.mubr.bf16.mxu0 %v2366_v0  ;;  %433 = vmatprep.subr.bf16.mxu0 %v2124_v1  ;;  %v2127_v3 = vld [vmem:[#allocation5 + $0x94] ss:$12 sps:$4 sm:$0xff]   ;;  %v2129_v4 = vld [vmem:[#allocation5 + $0x90] ss:$12 sps:$4 sm:$0xff]  }
  0x4b   : > { %434 = vmatpush1.bf16.msra.mxu0 %v2126_v2  ;;  %v2130_v5 = vld [vmem:[#allocation5 + $0x7c] ss:$12 sps:$4 sm:$0xff]   ;;  %v2132_v6 = vld [vmem:[#allocation5 + $0x78] ss:$12 sps:$4 sm:$0xff]   ;;  %v2135_v9 = vld [vmem:[#allocation5 + $0x60] ss:$12 sps:$4 sm:$0xff]  }
  0x4c   : > { %435 = vmatprep.subr.bf16.mxu0 %v2127_v3  ;;  %v2133_v7 = vld [vmem:[#allocation5 + $0x64] ss:$12 sps:$4 sm:$0xff]   ;;  %v209_v10 = vld [vmem:[%s2511_s29 + $0x8] sm:$0xff]  ;;  %v2139_v14 = vld [vmem:[#allocation5 + $0x34] ss:$12 sps:$4 sm:$0xff]   ;;  %vm2368_vm0 = vmmov 0  }
  0x4d   : > { %v2136_v11 = vld [vmem:[#allocation5 + $0x4c] ss:$12 sps:$4 sm:$0xff]   ;;  %v240_v12 = vpack.c.bf16 %v209_v10, %v208_v8  ;;  %v2138_v13 = vld [vmem:[#allocation5 + $0x48] ss:$12 sps:$4 sm:$0xff]   ;;  %v2141_v15 = vld [vmem:[#allocation5 + $0x30] ss:$12 sps:$4 sm:$0xff]  }
  0x4e   : > { %v2142_v16 = vld [vmem:[#allocation5 + $0x1c] ss:$12 sps:$4 sm:$0xff]   ;;  %v2144_v17 = vld [vmem:[#allocation5 + $0x18] ss:$12 sps:$4 sm:$0xff]   ;;  %v2147_v21 = vld [vmem:[#allocation5] ss:$12 sps:$4 sm:$0xff]  }
  0x4f   : > { %436 = vmatpush1.bf16.msra.mxu0 %v2129_v4  ;;  %1864 = vmatprep.mubr.bf16.mxu1 %v240_v12  ;;  %v2145_v18 = vld [vmem:[#allocation5 + $0x4] ss:$12 sps:$4 sm:$0xff]   ;;  %v2150_v22 = vld [vmem:[#allocation5 + $0x80] ss:$12 sps:$4 sm:$0xff]   ;;  %v2151_v23 = vld [vmem:[#allocation5 + $0x68] ss:$12 sps:$4 sm:$0xff]  }
  0x50   : > { %437 = vmatprep.subr.bf16.mxu0 %v2130_v5  ;;  %v2148_v19 = vld [vmem:[#allocation5 + $0xb0] ss:$12 sps:$4 sm:$0xff]   ;;  %v2149_v20 = vld [vmem:[#allocation5 + $0x98] ss:$12 sps:$4 sm:$0xff]   ;;  %v213_v30 = vld [vmem:[%s2511_s29 + $0x28] sm:$0xff]  ;;  %v2367_v10 = vmov 0.0  }
  0x51   : > { %1848 = vmatprep.subr.bf16.mxu1 %v2148_v19  ;;  %v210_v24 = vld [vmem:[%s2511_s29 + $0x10] sm:$0xff]  ;;  %v211_v25 = vld [vmem:[%s2511_s29 + $0x18] sm:$0xff]  ;;  %v212_v29 = vld [vmem:[%s2511_s29 + $0x20] sm:$0xff]  ;;  %vm1027_vm1 = vcmask 523264   ;;  %s2056_s17 = smul.u32 160, %s2507_s26  ;;  %p3272_p10 = scmp.ne.s32.totalorder %s3259_s6, 0 }
  0x52   : > { %1849 = vmatpush3.bf16.msra.mxu1 %v2148_v19  ;;  %v241_v26 = vpack.c.bf16 %v211_v25, %v210_v24  ;;  %v2152_v27 = vld [vmem:[#allocation5 + $0x50] ss:$12 sps:$4 sm:$0xff]   ;;  %v2153_v28 = vld [vmem:[#allocation5 + $0x38] ss:$12 sps:$4 sm:$0xff]   ;;  %v242_v31 = vpack.c.bf16 %v213_v30, %v212_v29  ;;  %v2154_v32 = vld [vmem:[#allocation5 + $0x20] ss:$12 sps:$4 sm:$0xff]  }
  0x53   : > { %438 = vmatpush1.bf16.msra.mxu0 %v2132_v6  ;;  %1850 = vmatprep.subr.bf16.mxu1 %v2149_v20  ;;  %v2155_v33 = vld [vmem:[#allocation5 + $0x8] ss:$12 sps:$4 sm:$0xff]   ;;  %v215_v35 = vld [vmem:[%s2511_s29 + $0x38] sm:$0xff]  ;;  %v216_v37 = vld [vmem:[%s2511_s29 + $0x40] sm:$0xff]  ;;  %s3175_s22 = scalar_lea.vmem [#allocation7], %s2056_s17  ;;  %s2057_s23 = smul.u32 2560, %s2413_s16 }
  0x54   : > { %439 = vmatprep.subr.bf16.mxu0 %v2133_v7  ;;  %v214_v34 = vld [vmem:[%s2511_s29 + $0x30] sm:$0xff]  ;;  %v217_v38 = vld [vmem:[%s2511_s29 + $0x48] sm:$0xff]  ;;  %v219_v41 = vld [vmem:[%s2511_s29 + $0x58] sm:$0xff]  ;;  %s1631_s25 = sshll.u32 %s3175_s22, 4  ;;  %s1617_s16 = scalar_lea.sflag [#allocation4], %s2507_s26  ;;  %s3203_s25 = int_to_ptr.vmem [resolvable:$true] %s1631_s25 }
  0x55   : > { %v243_v36 = vpack.c.bf16 %v215_v35, %v214_v34  ;;  %v244_v39 = vpack.c.bf16 %v217_v38, %v216_v37  ;;  %v218_v40 = vld [vmem:[%s2511_s29 + $0x50] sm:$0xff]  ;;  %v220_v43 = vld [vmem:[%s2511_s29 + $0x60] sm:$0xff]  ;;  %v221_v44 = vld [vmem:[%s2511_s29 + $0x68] sm:$0xff]  ;;  %s3201_s7 = scalar_lea.hbm %s3249_s3, %s2057_s23  ;;  %s2290_s8 = scalar_lea.vmem %s3203_s25, 2560 }
  0x56   : > { %1851 = vmatpush3.bf16.msra.mxu1 %v2149_v20  ;;  %v245_v42 = vpack.c.bf16 %v219_v41, %v218_v40  ;;  %v246_v45 = vpack.c.bf16 %v221_v44, %v220_v43  ;;  %v222_v46 = vld [vmem:[%s2511_s29 + $0x70] sm:$0xff]  ;;  %v223_v47 = vld [vmem:[%s2511_s29 + $0x78] sm:$0xff]  ;;  %v224_v48 = vld [vmem:[%s2511_s29 + $0x80] sm:$0xff]  ;;  %v290_v20 = vlaneseq  ;;  %p2291_p3 = scmp.ne.s32.totalorder %s3203_s25, %s2290_s8  ;;  %s2369_s9 = smov [#allocation7]  }
  0x57   : > { %440 = vmatpush1.bf16.msra.mxu0 %v2135_v9  ;;  %1852 = vmatprep.subr.bf16.mxu1 %v2150_v22  ;;  %v225_v49 = vld [vmem:[%s2511_s29 + $0x88] sm:$0xff]  ;;  %v247_v50 = vpack.c.bf16 %v223_v47, %v222_v46  ;;  %v226_v52 = vld [vmem:[%s2511_s29 + $0x90] sm:$0xff]  ;;  %v227_v53 = vld [vmem:[%s2511_s29 + $0x98] sm:$0xff]  ;;  %s2294_s10 = sshll.u32 %s2369_s9, 4  ;;  %s2295_s10 = int_to_ptr.vmem [resolvable:$false] %s2294_s10 }
  0x58   : > { %441 = vmatprep.subr.bf16.mxu0 %v2136_v11  ;;  %v248_v51 = vpack.c.bf16 %v225_v49, %v224_v48  ;;  %v228_v54 = vld [vmem:[%s2511_s29 + $0xa0] sm:$0xff]  ;;  %v229_v55 = vld [vmem:[%s2511_s29 + $0xa8] sm:$0xff]  ;;  %v249_v56 = vpack.c.bf16 %v227_v53, %v226_v52  ;;  %v230_v58 = vld [vmem:[%s2511_s29 + $0xb0] sm:$0xff]  ;;  %p2292_p7 = pnand %p2291_p3, %p3272_p10  ;;  %s2296_s11 = scalar_lea.vmem %s2295_s10, 5120 }
  0x59   : > { %v250_v57 = vpack.c.bf16 %v229_v55, %v228_v54  ;;  %v231_v59 = vld [vmem:[%s2511_s29 + $0xb8] sm:$0xff]  ;;  %v232_v60 = vld [vmem:[%s2511_s29 + $0xc0] sm:$0xff]  ;;  %v233_v61 = vld [vmem:[%s2511_s29 + $0xc8] sm:$0xff]  ;;  %p2297_p12 = scmp.lt.s32.totalorder %s3203_s25, %s2295_s10  ;;  %p2298_p2 = scmp.lt.s32.totalorder %s2296_s11, %s2290_s8 }
  0x5a   : > { %1853 = vmatpush3.bf16.msra.mxu1 %v2150_v22  ;;  %v251_v62 = vpack.c.bf16 %v231_v59, %v230_v58  ;;  %v252_v63 = vpack.c.bf16 %v233_v61, %v232_v60  ;;  %v234_v1 = vld [vmem:[%s2511_s29 + $0xd0] sm:$0xff]  ;;  %v235_v2 = vld [vmem:[%s2511_s29 + $0xd8] sm:$0xff]  ;;  %v236_v3 = vld [vmem:[%s2511_s29 + $0xe0] sm:$0xff]  ;;  %p2293_p11 = pneg %p2292_p7 }
  0x5b   : > { %442 = vmatpush1.bf16.msra.mxu0 %v2138_v13  ;;  %1854 = vmatprep.subr.bf16.mxu1 %v2151_v23  ;;  %v237_v4 = vld [vmem:[%s2511_s29 + $0xe8] sm:$0xff]  ;;  %v253_v5 = vpack.c.bf16 %v235_v2, %v234_v1  ;;  %v238_v7 = vld [vmem:[%s2511_s29 + $0xf0] sm:$0xff]  ;;  %v239_v8 = vld [vmem:[%s2511_s29 + $0xf8] sm:$0xff]  ;;  %p2299_p13 = por %p2298_p2, %p2297_p12 }
  0x5c   : > { %443 = vmatprep.subr.bf16.mxu0 %v2139_v14  ;;  %v254_v6 = vpack.c.bf16 %v237_v4, %v236_v3  ;;  %v255_v9 = vpack.c.bf16 %v239_v8, %v238_v7 }
  0x5d   : > { %p2300_p0 = pnand %p2299_p13, %p2293_p11 }
  0x5e   : > { %1855 = vmatpush3.bf16.msra.mxu1 %v2151_v23  ;;  %v2583_v23 = vshrl.u32 %v290_v20, 7 }
  0x5f   : > { %444 = vmatpush1.bf16.msra.mxu0 %v2141_v15  ;;  %1856 = vmatprep.subr.bf16.mxu1 %v2152_v27 }
  0x60   : > { %445 = vmatprep.subr.bf16.mxu0 %v2142_v16  ;;  %v296_v25 = vsub.s32 1, %v2583_v23  ;;  %v292_v54 = vsub.s32 0, %v2583_v23 }
  0x62   : > { %1857 = vmatpush3.bf16.msra.mxu1 %v2152_v27  ;;  %v2589_v27 = vld [vmem:[%s3248_s2] sm:$0x7] }
  0x63   : > { %446 = vmatpush1.bf16.msra.mxu0 %v2144_v17  ;;  %1858 = vmatprep.subr.bf16.mxu1 %v2153_v28  ;;  %v2592_v29 = vrot.slane %v2589_v27, %v296_v25  ;;  %v2631_v61 = vrot.slane %v2589_v27, %v292_v54 }
  0x64   : > { %447 = vmatprep.subr.bf16.mxu0 %v2145_v18 }
  0x66   : > { %1859 = vmatpush3.bf16.msra.mxu1 %v2153_v28 }
  0x67   : > { %448 = vmatpush1.bf16.msra.mxu0 %v2147_v21  ;;  %1860 = vmatprep.subr.bf16.mxu1 %v2154_v32 }
  0x68   : > { %1936 = vmatprep.subr.bf16.mxu0 %v2367_v10 }
  0x6a   : > { %466 = vmatmul.mubr.bf16.vlgmr.msra.gmra.mxu0 %v240_v12  ;;  %1861 = vmatpush3.bf16.msra.mxu1 %v2154_v32 }
  0x6b   : > { %475 = vmatprep.mubr.bf16.mxu0 %v2366_v0  ;;  %1862 = vmatprep.subr.bf16.mxu1 %v2155_v33 }
  0x6e   : > { %1863 = vmatpush3.bf16.msra.mxu1 %v2155_v33 }
  0x6f   : > { %1896 = vmatprep.subr.bf16.mxu1 %v2367_v10 }
  0x71   : > { %1865 = vmatmul.mubr.bf16.vlgmr.msra.gmra.mxu1 %v241_v26 }
  0x72   : > { %476 = vmatmul.mubr.bf16.gmra.mxu0 %v241_v26  ;;  %1868 = vmatprep.mubr.bf16.mxu1 %v242_v31 }
  0x73   : > { %485 = vmatprep.mubr.bf16.mxu0 %v2366_v0 }
  0x79   : > { %1869 = vmatmul.mubr.bf16.gmra.mxu1 %v243_v36 }
  0x7a   : > { %486 = vmatmul.mubr.bf16.gmra.mxu0 %v242_v31  ;;  %1872 = vmatprep.mubr.bf16.mxu1 %v244_v39 }
  0x7b   : > { %494 = vmatprep.mubr.bf16.mxu0 %v2366_v0 }
  0x81   : > { %1873 = vmatmul.mubr.bf16.gmra.mxu1 %v245_v42 }
  0x82   : > { %495 = vmatmul.mubr.bf16.gmra.mxu0 %v243_v36  ;;  %1876 = vmatprep.mubr.bf16.mxu1 %v246_v45 }
  0x83   : > { %502 = vmatprep.mubr.bf16.mxu0 %v2366_v0 }
  0x89   : > { %1877 = vmatmul.mubr.bf16.gmra.mxu1 %v247_v50 }
  0x8a   : > { %503 = vmatmul.mubr.bf16.gmra.mxu0 %v244_v39  ;;  %1880 = vmatprep.mubr.bf16.mxu1 %v248_v51 }
  0x8b   : > { %512 = vmatprep.mubr.bf16.mxu0 %v2366_v0 }
  0x91   : > { %1881 = vmatmul.mubr.bf16.gmra.mxu1 %v249_v56 }
  0x92   : > { %513 = vmatmul.mubr.bf16.gmra.mxu0 %v245_v42  ;;  %1884 = vmatprep.mubr.bf16.mxu1 %v250_v57 }
  0x93   : > { %522 = vmatprep.mubr.bf16.mxu0 %v2366_v0 }
  0x99   : > { %1885 = vmatmul.mubr.bf16.gmra.mxu1 %v251_v62 }
  0x9a   : > { %523 = vmatmul.mubr.bf16.gmra.mxu0 %v246_v45  ;;  %1888 = vmatprep.mubr.bf16.mxu1 %v252_v63 }
  0x9b   : > { %531 = vmatprep.mubr.bf16.mxu0 %v2366_v0 }
  0xa1   : > { %1889 = vmatmul.mubr.bf16.gmra.mxu1 %v253_v5 }
  0xa2   : > { %532 = vmatmul.mubr.bf16.gmra.mxu0 %v247_v50  ;;  %1892 = vmatprep.mubr.bf16.mxu1 %v254_v6 }
  0xa3   : > { %539 = vmatprep.mubr.bf16.mxu0 %v2366_v0 }
  0xa9   : > { %1893 = vmatmul.mubr.bf16.gmra.mxu1 %v255_v9 }
  0xaa   : > { %540 = vmatmul.mubr.bf16.gmra.mxu0 %v248_v51  ;;  %1904 = vmatprep.mubr.msk.bf16.mxu1 %vm2368_vm0, %v2367_v10 }
  0xab   : > { %549 = vmatprep.mubr.bf16.mxu0 %v2366_v0 }
  0xb2   : > { %550 = vmatmul.mubr.bf16.gmra.mxu0 %v249_v56 }
  0xb3   : > { %559 = vmatprep.mubr.bf16.mxu0 %v2366_v0 }
  0xba   : > { %560 = vmatmul.mubr.bf16.gmra.mxu0 %v250_v57 }
  0xbb   : > { %568 = vmatprep.mubr.bf16.mxu0 %v2366_v0 }
  0xc2   : > { %569 = vmatmul.mubr.bf16.gmra.mxu0 %v251_v62 }
  0xc3   : > { %576 = vmatprep.mubr.bf16.mxu0 %v2366_v0 }
  0xca   : > { %577 = vmatmul.mubr.bf16.gmra.mxu0 %v252_v63 }
  0xcb   : > { %586 = vmatprep.mubr.bf16.mxu0 %v2366_v0 }
  0xd2   : > { %587 = vmatmul.mubr.bf16.gmra.mxu0 %v253_v5 }
  0xd3   : > { %596 = vmatprep.mubr.bf16.mxu0 %v2366_v0 }
  0xda   : > { %597 = vmatmul.mubr.bf16.gmra.mxu0 %v254_v6 }
  0xdb   : > { %605 = vmatprep.mubr.bf16.mxu0 %v2366_v0 }
  0xe2   : > { %606 = vmatmul.mubr.bf16.gmra.mxu0 %v255_v9 }
  0xe3   : > { %1944 = vmatprep.mubr.msk.bf16.mxu0 %vm2368_vm0, %v2367_v10 }
 0x12a   : > { %v2575_v11 = vpop.f32.mrf.mxu0 }
 0x12b   : > { %v468_v4 = vadd.f32 %v2575_v11, %v2631_v61 }
 0x12c   : > { %v469_v12 = vpop.f32.mrf.mxu0 }
 0x12d   : > { %v470_v57 = vadd.f32 %v469_v12, %v2592_v29 }
 0x12e   : > { %v471_v13 = vpop.f32.mrf.mxu0 }
 0x12f   : > { %v472_v1 = vadd.f32 %v471_v13, %v2631_v61 }
 0x130   : > { %v473_v14 = vpop.f32.mrf.mxu0 }
 0x131   : > { %v2618_v50 = vpop.f32.mrf.mxu1  ;;  %v474_v53 = vadd.f32 %v473_v14, %v2592_v29  ;;  %v775_v9 = vpack.c.bf16 %v472_v1, %v468_v4 }
 0x132   : > { %v2577_v15 = vpop.f32.mrf.mxu0 }
 0x133   : > { %v2621_v52 = vpop.f32.mrf.mxu1  ;;  %v787_v60 = vpack.c.bf16 %v474_v53, %v470_v57 }
 0x134   : > { %v479_v16 = vpop.f32.mrf.mxu0 }
 0x135   : > { %v480_v46 = vadd.f32 %v479_v16, %v2592_v29  ;;  %v2625_v56 = vpop.f32.mrf.mxu1 }
 0x136   : > { %v2579_v17 = vpop.f32.mrf.mxu0 }
 0x137   : > { %v2628_v59 = vpop.f32.mrf.mxu1  ;;  %v482_v11 = vadd.f32 %v2579_v17, %v2631_v61 }
 0x138   : > { %v483_v18 = vpop.f32.mrf.mxu0 }
 0x139   : > { %v484_v44 = vadd.f32 %v483_v18, %v2592_v29  ;;  %v2633_v63 = vpop.f32.mrf.mxu1 }
 0x13a   : > { %v2581_v0 = vpop.f32.mrf.mxu0 }
 0x13b   : > { %v788_v48 = vpack.c.bf16 %v484_v44, %v480_v46  ;;  %v2637_v3 = vpop.f32.mrf.mxu1  ;;  %v300_v46 = vsub.s32 2, %v2583_v23 }
 0x13c   : > { %v489_v19 = vpop.f32.mrf.mxu0 }
 0x13d   : > { %v490_v39 = vadd.f32 %v489_v19, %v2592_v29  ;;  %v2641_v6 = vpop.f32.mrf.mxu1  ;;  %v2700_v57 = vrot.slane %v2589_v27, %v300_v46 }
 0x13e   : > { %v491_v21 = vpop.f32.mrf.mxu0 }
 0x13f   : > { %v2647_v14 = vpop.f32.mrf.mxu1 }
 0x140   : > { %v492_v22 = vpop.f32.mrf.mxu0 }
 0x141   : > { %v493_v37 = vadd.f32 %v492_v22, %v2592_v29  ;;  %v2651_v18 = vpop.f32.mrf.mxu1  ;;  %v478_v22 = vadd.f32 %v2577_v15, %v2631_v61  ;;  %v488_v15 = vadd.f32 %v2581_v0, %v2631_v61 }
 0x142   : > { %v496_v24 = vpop.f32.mrf.mxu0 }
 0x143   : > { %v789_v41 = vpack.c.bf16 %v493_v37, %v490_v39  ;;  %v2660_v20 = vpop.f32.mrf.mxu1 }
 0x144   : > { %v497_v26 = vpop.f32.mrf.mxu0 }
 0x145   : > { %v498_v31 = vadd.f32 %v497_v26, %v2592_v29  ;;  %v2667_v25 = vpop.f32.mrf.mxu1 }
 0x146   : > { %v499_v28 = vpop.f32.mrf.mxu0 }
 0x147   : > { %v776_v28 = vpack.c.bf16 %v482_v11, %v478_v22  ;;  %v2672_v17 = vpop.f32.mrf.mxu1 }
 0x148   : > { %v500_v30 = vpop.f32.mrf.mxu0 }
 0x149   : > { %v501_v32 = vadd.f32 %v500_v30, %v2592_v29 }
 0x14a   : > { %v2596_v33 = vpop.f32.mrf.mxu0 }
 0x14b   : > { %v790_v34 = vpack.c.bf16 %v501_v32, %v498_v31 }
 0x14c   : > { %v2598_v35 = vpop.f32.mrf.mxu0 }
 0x14d   : > { %1897 = vmatpush3.bf16.xpose.msra.mxu1 %v790_v34  ;;  %v2676_v34 = vpop.f32.mrf.mxu1 }
 0x14e   : > { %v2600_v36 = vpop.f32.mrf.mxu0  ;;  %1898 = vmatprep.subr.bf16.mxu1 %v2367_v10 }
 0x14f   : > { %v2685_v39 = vpop.f32.mrf.mxu1  ;;  %v509_v22 = vadd.f32 %v2600_v36, %v2631_v61 }
 0x150   : > { %v2604_v38 = vpop.f32.mrf.mxu0 }
 0x152   : > { %v2607_v40 = vpop.f32.mrf.mxu0 }
 0x154   : > { %v2609_v42 = vpop.f32.mrf.mxu0 }
 0x155   : > { %1899 = vmatpush3.bf16.xpose.msra.mxu1 %v789_v41 }
 0x156   : > { %v2611_v43 = vpop.f32.mrf.mxu0  ;;  %1900 = vmatprep.subr.bf16.mxu1 %v2367_v10 }
 0x158   : > { %v520_v45 = vpop.f32.mrf.mxu0 }
 0x159   : > { %v521_v41 = vadd.f32 %v520_v45, %v2592_v29 }
 0x15a   : > { %v2616_v47 = vpop.f32.mrf.mxu0 }
 0x15c   : > { %v526_v49 = vpop.f32.mrf.mxu0 }
 0x15d   : > { %1901 = vmatpush3.bf16.xpose.msra.mxu1 %v788_v48  ;;  %v527_v26 = vadd.f32 %v526_v49, %v2592_v29  ;;  %v2691_v48 = vpop.f32.mrf.mxu1  ;;  %v517_v49 = vadd.f32 %v2609_v42, %v2592_v29 }
 0x15e   : > { %v528_v51 = vpop.f32.mrf.mxu0  ;;  %1902 = vmatprep.subr.bf16.mxu1 %v2367_v10 }
 0x15f   : > { %v777_v51 = vpack.c.bf16 %v488_v15, %v488_v15  ;;  %v2697_v0 = vpop.f32.mrf.mxu1  ;;  %v792_v54 = vpack.c.bf16 %v521_v41, %v517_v49  ;;  %v505_v15 = vadd.f32 %v2596_v33, %v2631_v61 }
 0x160   : > { %v529_v55 = vpop.f32.mrf.mxu0 }
 0x161   : > { %v530_v21 = vadd.f32 %v529_v55, %v2592_v29  ;;  %v1882_v45 = vpop.f32.mrf.mxu1  ;;  %v778_v36 = vpack.c.bf16 %v509_v22, %v505_v15 }
 0x162   : > { %v533_v58 = vpop.f32.mrf.mxu0  ;;  %v2706_v42 = vadd.f32 %v1882_v45, %v2700_v57 }
 0x163   : > { %v793_v31 = vpack.c.bf16 %v530_v21, %v527_v26  ;;  %v712_v58 = vpop.f32.mrf.mxu1 }
 0x164   : > { %v534_v62 = vpop.f32.mrf.mxu0 }
 0x165   : > { %1903 = vmatpush3.bf16.xpose.msra.mxu1 %v787_v60  ;;  %v535_v7 = vadd.f32 %v534_v62, %v2592_v29  ;;  %v511_v60 = vadd.f32 %v2604_v38, %v2592_v29  ;;  %v2711_v62 = vadd.f32 %v712_v58, %v2700_v57  ;;  %v1883_v1 = vpop.f32.mrf.mxu1 }
 0x166   : > { %v536_v2 = vpop.f32.mrf.mxu0  ;;  %1916 = vmatprep.subr.bf16.mxu1 %v2367_v10  ;;  %v2716_v4 = vadd.f32 %v1883_v1, %v2700_v57 }
 0x167   : > { %v507_v2 = vadd.f32 %v2598_v35, %v2592_v29 }
 0x168   : > { %v537_v5 = vpop.f32.mrf.mxu0 }
 0x169   : > { %v538_v8 = vadd.f32 %v537_v5, %v2592_v29 }
 0x16a   : > { %v2645_v12 = vpop.f32.mrf.mxu0 }
 0x16b   : > { %v794_v13 = vpack.c.bf16 %v538_v8, %v535_v7  ;;  %v715_v7 = vpop.f32.mrf.mxu1  ;;  %v791_v8 = vpack.c.bf16 %v511_v60, %v507_v2 }
 0x16c   : > { %v2649_v16 = vpop.f32.mrf.mxu0  ;;  %1905 = vmatmul.mubr.bf16.vlgmr.msra.gmra.mxu1 %v775_v9 }
 0x16d   : > { %1917 = vmatpush3.bf16.xpose.msra.mxu1 %v794_v13  ;;  %1908 = vmatprep.mubr.msk.bf16.mxu1 %vm2368_vm0, %v2367_v10  ;;  %v2721_v13 = vadd.f32 %v715_v7, %v2700_v57  ;;  %v1886_v11 = vpop.f32.mrf.mxu1 }
 0x16e   : > { %v2657_v19 = vpop.f32.mrf.mxu0  ;;  %1918 = vmatprep.subr.bf16.mxu1 %v2367_v10  ;;  %v2726_v35 = vadd.f32 %v1886_v11, %v2700_v57 }
 0x170   : > { %v2665_v24 = vpop.f32.mrf.mxu0 }
 0x172   : > { %v2670_v30 = vpop.f32.mrf.mxu0 }
 0x174   : > { %v2674_v32 = vpop.f32.mrf.mxu0  ;;  %1909 = vmatmul.mubr.bf16.gmra.mxu1 %v776_v28  ;;  %v728_v28 = vpop.f32.mrf.mxu1 }
 0x175   : > { %1919 = vmatpush3.bf16.xpose.msra.mxu1 %v793_v31  ;;  %1912 = vmatprep.mubr.msk.bf16.mxu1 %vm2368_vm0, %v2367_v10  ;;  %v2732_v31 = vadd.f32 %v728_v28, %v2700_v57  ;;  %v515_v28 = vadd.f32 %v2607_v40, %v2631_v61 }
 0x176   : > { %v2682_v37 = vpop.f32.mrf.mxu0  ;;  %1920 = vmatprep.subr.bf16.mxu1 %v2367_v10  ;;  %v1887_v46 = vpop.f32.mrf.mxu1 }
 0x178   : > { %v2688_v44 = vpop.f32.mrf.mxu0 }
 0x17a   : > { %v2695_v53 = vpop.f32.mrf.mxu0 }
 0x17c   : > { %v563_v55 = vpop.f32.mrf.mxu0  ;;  %1913 = vmatmul.mubr.bf16.gmra.mxu1 %v777_v51 }
 0x17d   : > { %1921 = vmatpush3.bf16.xpose.msra.mxu1 %v792_v54  ;;  %1924 = vmatprep.mubr.msk.bf16.mxu1 %vm2368_vm0, %v2367_v10  ;;  %v2739_v54 = vadd.f32 %v1887_v46, %v2700_v57  ;;  %v564_v46 = vadd.f32 %v563_v55, %v2592_v29 }
 0x17e   : > { %v565_v23 = vpop.f32.mrf.mxu0  ;;  %1922 = vmatprep.subr.bf16.mxu1 %v2367_v10 }
 0x17f   : > { %v731_v23 = vpop.f32.mrf.mxu1  ;;  %v1331_v60 = vpack.c.bf16 %v2739_v54, %v2726_v35  ;;  %v3266_v35 = vpack.c.bf16 %v2716_v4, %v2706_v42 }
 0x180   : > { %v566_v27 = vpop.f32.mrf.mxu0  ;;  %v2746_v1 = vadd.f32 %v731_v23, %v2700_v57 }
 0x181   : > { %v1890_v2 = vpop.f32.mrf.mxu1  ;;  %v567_v22 = vadd.f32 %v566_v27, %v2592_v29 }
 0x182   : > { %v570_v5 = vpop.f32.mrf.mxu0  ;;  %v2755_v7 = vadd.f32 %v1890_v2, %v2700_v57 }
 0x183   : > { %v744_v11 = vpop.f32.mrf.mxu1  ;;  %v797_v23 = vpack.c.bf16 %v567_v22, %v564_v46 }
 0x184   : > { %v571_v38 = vpop.f32.mrf.mxu0 }
 0x185   : > { %1923 = vmatpush3.bf16.xpose.msra.mxu1 %v791_v8  ;;  %v572_v49 = vadd.f32 %v571_v38, %v2592_v29  ;;  %v519_v8 = vadd.f32 %v2611_v43, %v2631_v61 }
 0x186   : > { %v573_v26 = vpop.f32.mrf.mxu0  ;;  %1956 = vmatprep.subr.bf16.mxu1 %v2367_v10 }
 0x187   : > { %v2764_v26 = vadd.f32 %v744_v11, %v2700_v57  ;;  %v525_v11 = vadd.f32 %v2616_v47, %v2631_v61 }
 0x188   : > { %v574_v41 = vpop.f32.mrf.mxu0 }
 0x189   : > { %v575_v51 = vadd.f32 %v574_v41, %v2592_v29  ;;  %v1891_v41 = vpop.f32.mrf.mxu1  ;;  %v780_v47 = vpack.c.bf16 %v525_v11, %v525_v11 }
 0x18a   : > { %v2741_v45 = vpop.f32.mrf.mxu0  ;;  %v2772_v43 = vadd.f32 %v1891_v41, %v2700_v57  ;;  %v558_v41 = vadd.f32 %v2688_v44, %v2592_v29 }
 0x18b   : > { %v798_v58 = vpack.c.bf16 %v575_v51, %v572_v49  ;;  %v779_v49 = vpack.c.bf16 %v519_v8, %v515_v28 }
 0x18c   : > { %v2748_v33 = vpop.f32.mrf.mxu0  ;;  %1925 = vmatmul.mubr.bf16.vlgmr.msra.gmra.mxu1 %v778_v36  ;;  %v747_v36 = vpop.f32.mrf.mxu1 }
 0x18d   : > { %1937 = vmatpush3.bf16.xpose.msra.mxu0 %v798_v58  ;;  %1928 = vmatprep.mubr.msk.bf16.mxu1 %vm2368_vm0, %v2367_v10  ;;  %v2779_v58 = vadd.f32 %v747_v36, %v2700_v57 }
 0x18e   : > { %v2759_v38 = vpop.f32.mrf.mxu0  ;;  %1938 = vmatprep.subr.bf16.mxu0 %v2367_v10  ;;  %v1894_v2 = vpop.f32.mrf.mxu1 }
 0x18f   : > { %v2788_v8 = vadd.f32 %v1894_v2, %v2700_v57 }
 0x190   : > { %v2768_v15 = vpop.f32.mrf.mxu0  ;;  %v760_v28 = vpop.f32.mrf.mxu1 }
 0x191   : > { %v2798_v46 = vadd.f32 %v760_v28, %v2700_v57 }
 0x192   : > { %v2774_v51 = vpop.f32.mrf.mxu0  ;;  %v1895_v36 = vpop.f32.mrf.mxu1 }
 0x193   : > { %v2805_v2 = vadd.f32 %v1895_v36, %v2700_v57 }
 0x194   : > { %v2781_v40 = vpop.f32.mrf.mxu0  ;;  %1929 = vmatmul.mubr.bf16.gmra.mxu1 %v779_v49  ;;  %v763_v27 = vpop.f32.mrf.mxu1 }
 0x195   : > { %1939 = vmatpush3.bf16.xpose.msra.mxu0 %v797_v23  ;;  %1932 = vmatprep.mubr.msk.bf16.mxu1 %vm2368_vm0, %v2367_v10  ;;  %v554_v23 = vadd.f32 %v2674_v32, %v2592_v29  ;;  %v2812_v28 = vadd.f32 %v763_v27, %v2700_v57  ;;  %v544_v27 = vadd.f32 %v2649_v16, %v2592_v29 }
 0x196   : > { %v2792_v22 = vpop.f32.mrf.mxu0  ;;  %1940 = vmatprep.subr.bf16.mxu0 %v2367_v10  ;;  %v676_v32 = vadd.f32 %v2641_v6, %v2700_v57  ;;  %v657_v6 = vadd.f32 %v2618_v50, %v2700_v57 }
 0x197   : > { %v796_v21 = vpack.c.bf16 %v558_v41, %v554_v23  ;;  %v548_v41 = vadd.f32 %v2665_v24, %v2592_v29  ;;  %v542_v24 = vadd.f32 %v2645_v12, %v2631_v61  ;;  %v556_v12 = vadd.f32 %v2682_v37, %v2631_v61 }
 0x198   : > { %v2800_v49 = vpop.f32.mrf.mxu0  ;;  %v649_v37 = vadd.f32 %v2621_v52, %v2700_v57 }
 0x199   : > { %v795_v44 = vpack.c.bf16 %v548_v41, %v544_v27  ;;  %v595_v52 = vadd.f32 %v2800_v49, %v2592_v29  ;;  %v581_v49 = vadd.f32 %v2748_v33, %v2592_v29  ;;  %v700_v33 = vadd.f32 %v2697_v0, %v2700_v57 }
 0x19a   : > { %v2807_v55 = vpop.f32.mrf.mxu0  ;;  %v589_v0 = vadd.f32 %v2774_v51, %v2631_v61 }
 0x19b   : > { %v599_v51 = vadd.f32 %v2807_v55, %v2631_v61 }
 0x19c   : > { %v600_v9 = vpop.f32.mrf.mxu0  ;;  %1933 = vmatmul.mubr.bf16.gmra.mxu1 %v780_v47 }
 0x19d   : > { %1941 = vmatpush3.bf16.xpose.msra.mxu0 %v796_v21  ;;  %1964 = vmatprep.mubr.msk.bf16.mxu1 %vm2368_vm0, %v2367_v10  ;;  %v546_v21 = vadd.f32 %v2657_v19, %v2631_v61  ;;  %v665_v19 = vadd.f32 %v2637_v3, %v2700_v57  ;;  %v660_v3 = vadd.f32 %v2625_v56, %v2700_v57 }
 0x19e   : > { %v602_v11 = vpop.f32.mrf.mxu0  ;;  %1942 = vmatprep.subr.bf16.mxu0 %v2367_v10 }
 0x19f   : > { %v673_v11 = vadd.f32 %v2633_v63, %v2700_v57  ;;  %v781_v27 = vpack.c.bf16 %v546_v21, %v542_v24  ;;  %v668_v63 = vadd.f32 %v2647_v14, %v2700_v57  ;;  %v601_v21 = vadd.f32 %v600_v9, %v2592_v29 }
 0x1a0   : > { %v603_v36 = vpop.f32.mrf.mxu0  ;;  %v652_v24 = vadd.f32 %v2628_v59, %v2700_v57  ;;  %v591_v59 = vadd.f32 %v2781_v40, %v2592_v29  ;;  %v705_v40 = vadd.f32 %v2676_v34, %v2700_v57  ;;  %v689_v34 = vadd.f32 %v2651_v18, %v2700_v57 }
 0x1a1   : > { %v604_v14 = vadd.f32 %v603_v36, %v2592_v29  ;;  %v684_v18 = vadd.f32 %v2672_v17, %v2700_v57 }
 0x1a2   : > { %v607_v23 = vpop.f32.mrf.mxu0  ;;  %v1320_v9 = vpack.c.bf16 %v652_v24, %v649_v37 }
 0x1a3   : > { %v801_v56 = vpack.c.bf16 %v604_v14, %v601_v21 }
 0x1a4   : > { %v608_v47 = vpop.f32.mrf.mxu0 }
 0x1a5   : > { %1943 = vmatpush3.bf16.xpose.msra.mxu0 %v795_v44  ;;  %v609_v41 = vadd.f32 %v608_v47, %v2592_v29  ;;  %v552_v47 = vadd.f32 %v2670_v30, %v2631_v61  ;;  %v562_v30 = vadd.f32 %v2695_v53, %v2631_v61  ;;  %v585_v53 = vadd.f32 %v2768_v15, %v2592_v29 }
 0x1a6   : > { %v610_v5 = vpop.f32.mrf.mxu0  ;;  %1976 = vmatprep.subr.bf16.mxu0 %v2367_v10  ;;  %v697_v15 = vadd.f32 %v2685_v39, %v2700_v57  ;;  %v593_v39 = vadd.f32 %v2792_v22, %v2631_v61 }
 0x1a7   : > { %v1323_v5 = vpack.c.bf16 %v676_v32, %v673_v11  ;;  %v1322_v32 = vpack.c.bf16 %v668_v63, %v665_v19  ;;  %v782_v50 = vpack.c.bf16 %v556_v12, %v552_v47  ;;  %v1321_v11 = vpack.c.bf16 %v660_v3, %v657_v6 }
 0x1a8   : > { %v611_v16 = vpop.f32.mrf.mxu0  ;;  %v783_v36 = vpack.c.bf16 %v562_v30, %v562_v30  ;;  %v579_v19 = vadd.f32 %v2741_v45, %v2631_v61  ;;  %v681_v45 = vadd.f32 %v2660_v20, %v2700_v57  ;;  %v786_v20 = vpack.c.bf16 %v599_v51, %v599_v51 }
 0x1a9   : > { %v612_v44 = vadd.f32 %v611_v16, %v2592_v29  ;;  %v800_v16 = vpack.c.bf16 %v595_v52, %v591_v59 }
 0x1ab   : > { %v802_v23 = vpack.c.bf16 %v612_v44, %v609_v41  ;;  %v799_v41 = vpack.c.bf16 %v585_v53, %v581_v49  ;;  %v708_v44 = vadd.f32 %v2691_v48, %v2700_v57  ;;  %v692_v48 = vadd.f32 %v2667_v25, %v2700_v57 }
 0x1ac   : > { %1945 = vmatmul.mubr.bf16.vlgmr.msra.gmra.mxu0 %v781_v27  ;;  %v583_v27 = vadd.f32 %v2759_v38, %v2631_v61  ;;  %v1326_v38 = vpack.c.bf16 %v700_v33, %v697_v15  ;;  %v1324_v25 = vpack.c.bf16 %v684_v18, %v681_v45 }
 0x1ad   : > { %1957 = vmatpush3.bf16.xpose.msra.mxu1 %v802_v23  ;;  %1948 = vmatprep.mubr.msk.bf16.mxu0 %vm2368_vm0, %v2367_v10  ;;  %v1327_v29 = vpack.c.bf16 %v708_v44, %v705_v40  ;;  %v1325_v63 = vpack.c.bf16 %v692_v48, %v689_v34  ;;  %v785_v23 = vpack.c.bf16 %v593_v39, %v589_v0 }
 0x1ae   : > { %1958 = vmatprep.subr.bf16.mxu1 %v2367_v10  ;;  %1977 = vmatpush3.bf16.msra.mxu0 %v1323_v5  ;;  %v784_v5 = vpack.c.bf16 %v583_v27, %v579_v19 }
 0x1af   : > { %1978 = vmatprep.subr.bf16.mxu0 %v2367_v10 }
 0x1b2   : > { %1979 = vmatpush3.bf16.msra.mxu0 %v1322_v32 }
 0x1b3   : > { %1980 = vmatprep.subr.bf16.mxu0 %v2367_v10 }
 0x1b4   : > { %1949 = vmatmul.mubr.bf16.gmra.mxu0 %v782_v50 }
 0x1b5   : > { %1959 = vmatpush3.bf16.xpose.msra.mxu1 %v801_v56  ;;  %1952 = vmatprep.mubr.msk.bf16.mxu0 %vm2368_vm0, %v2367_v10 }
 0x1b6   : > { %1960 = vmatprep.subr.bf16.mxu1 %v2367_v10  ;;  %1981 = vmatpush3.bf16.msra.mxu0 %v1321_v11 }
 0x1b7   : > { %1982 = vmatprep.subr.bf16.mxu0 %v2367_v10 }
 0x1ba   : > { %1983 = vmatpush3.bf16.msra.mxu0 %v1320_v9 }
 0x1bb   : > { %2016 = vmatprep.subr.bf16.mxu0 %v2367_v10 }
 0x1bc   : > { %1953 = vmatmul.mubr.bf16.gmra.mxu0 %v783_v36 }
 0x1bd   : > { %1961 = vmatpush3.bf16.xpose.msra.mxu1 %v800_v16  ;;  %1984 = vmatprep.mubr.msk.bf16.mxu0 %vm2368_vm0, %v2367_v10 }
 0x1be   : > { %1962 = vmatprep.subr.bf16.mxu1 %v2367_v10 }
 0x1c5   : > { %1963 = vmatpush3.bf16.xpose.msra.mxu1 %v799_v41 }
 0x1c6   : > { %1996 = vmatprep.subr.bf16.mxu1 %v2367_v10 }
 0x1cc   : > { %1965 = vmatmul.mubr.bf16.vlgmr.msra.gmra.mxu1 %v784_v5 }
 0x1cd   : > { %1968 = vmatprep.mubr.msk.bf16.mxu1 %vm2368_vm0, %v2367_v10  ;;  %1997 = vmatpush3.bf16.msra.mxu1 %v1327_v29 }
 0x1ce   : > { %1998 = vmatprep.subr.bf16.mxu1 %v2367_v10 }
 0x1d1   : > { %1999 = vmatpush3.bf16.msra.mxu1 %v1326_v38 }
 0x1d2   : > { %2000 = vmatprep.subr.bf16.mxu1 %v2367_v10 }
 0x1d4   : > { %1969 = vmatmul.mubr.bf16.gmra.mxu1 %v785_v23 }
 0x1d5   : > { %1972 = vmatprep.mubr.msk.bf16.mxu1 %vm2368_vm0, %v2367_v10  ;;  %2001 = vmatpush3.bf16.msra.mxu1 %v1325_v63 }
 0x1d6   : > { %2002 = vmatprep.subr.bf16.mxu1 %v2367_v10 }
 0x1d9   : > { %2003 = vmatpush3.bf16.msra.mxu1 %v1324_v25 }
 0x1da   : > { %2036 = vmatprep.subr.bf16.mxu1 %v2367_v10 }
 0x1dc   : > { %1973 = vmatmul.mubr.bf16.gmra.mxu1 %v786_v20 }
 0x1dd   : > { %2004 = vmatprep.mubr.msk.bf16.mxu1 %vm2368_vm0, %v2367_v10 }
 0x22c   : > { %v2912_v17 = vpop.f32.mrf.mxu1 }
 0x22d   : > { %v1028_v57 = vsel %vm1027_vm1, %v2912_v17, -inf }
 0x22e   : > { %1029 = vmax.xlane.f32.xlu0 %v1028_v57  ;;  %v1906_v22 = vpop.f32.mrf.mxu1 }
 0x230   : > { %v2916_v6 = vpop.f32.mrf.mxu1 }
 0x231   : > { %v1031_v61 = vsel %vm1027_vm1, %v2916_v6, -inf }
 0x232   : > { %1032 = vmax.xlane.f32.xlu0 %v1031_v61  ;;  %v1907_v55 = vpop.f32.mrf.mxu1 }
 0x234   : > { %v2920_v12 = vpop.f32.mrf.mxu1 }
 0x235   : > { %v1034_v3 = vsel %vm1027_vm1, %v2920_v12, -inf }
 0x236   : > { %1035 = vmax.xlane.f32.xlu0 %v1034_v3  ;;  %v1910_v32 = vpop.f32.mrf.mxu1 }
 0x238   : > { %v2924_v14 = vpop.f32.mrf.mxu1 }
 0x239   : > { %v1037_v16 = vsel %vm1027_vm1, %v2924_v14, -inf }
 0x23a   : > { %v1911_v47 = vpop.f32.mrf.mxu1 }
 0x23c   : > { %v2926_v21 = vpop.f32.mrf.mxu1 }
 0x23d   : > { %v1040_v40 = vsel %vm1027_vm1, %v2926_v21, -inf }
 0x23e   : > { %v1914_v50 = vpop.f32.mrf.mxu1 }
 0x240   : > { %v856_v37 = vpop.f32.mrf.mxu1 }
 0x242   : > { %v1915_v11 = vpop.f32.mrf.mxu1 }
 0x24c   : > { %v2928_v24 = vpop.f32.mrf.mxu1 }
 0x24d   : > { %v1043_v56 = vsel %vm1027_vm1, %v2928_v24, -inf }
 0x24e   : > { %1044 = vmax.xlane.f32.xlu1 %v1043_v56  ;;  %v1926_v30 = vpop.f32.mrf.mxu1 }
 0x250   : > { %v2932_v9 = vpop.f32.mrf.mxu1 }
 0x251   : > { %v1046_v52 = vsel %vm1027_vm1, %v2932_v9, -inf }
 0x252   : > { %1047 = vmax.xlane.f32.xlu1 %v1046_v52  ;;  %v1927_v59 = vpop.f32.mrf.mxu1 }
 0x254   : > { %v2936_v36 = vpop.f32.mrf.mxu1 }
 0x255   : > { %v1049_v53 = vsel %vm1027_vm1, %v2936_v36, -inf }
 0x256   : > { %1038 = vmax.xlane.f32.xlu1 %v1037_v16  ;;  %1050 = vmax.xlane.f32.xlu0 %v1049_v53  ;;  %v1930_v49 = vpop.f32.mrf.mxu1 }
 0x258   : > { %v2942_v41 = vpop.f32.mrf.mxu1 }
 0x259   : > { %v1052_v44 = vsel %vm1027_vm1, %v2942_v41, -inf }
 0x25a   : > { %1041 = vmax.xlane.f32.xlu0 %v1040_v40  ;;  %1053 = vmax.xlane.f32.xlu1 %v1052_v44  ;;  %v1931_v27 = vpop.f32.mrf.mxu1 }
 0x25c   : > { %v2948_v19 = vpop.f32.mrf.mxu1 }
 0x25d   : > { %v1055_v15 = vsel %vm1027_vm1, %v2948_v19, -inf }
 0x25e   : > { %1056 = vmax.xlane.f32.xlu1 %v1055_v15  ;;  %v1934_v29 = vpop.f32.mrf.mxu1 }
 0x260   : > { %v912_v33 = vpop.f32.mrf.mxu1 }
 0x262   : > { %v1935_v5 = vpop.f32.mrf.mxu1 }
 0x26c   : > { %v2952_v34 = vpop.f32.mrf.mxu0 }
 0x26d   : > { %v1058_v48 = vsel %vm1027_vm1, %v2952_v34, -inf }
 0x26e   : > { %v1946_v38 = vpop.f32.mrf.mxu0  ;;  %1059 = vmax.xlane.f32.xlu0 %v1058_v48 }
 0x270   : > { %v2956_v39 = vpop.f32.mrf.mxu0 }
 0x271   : > { %v1061_v0 = vsel %vm1027_vm1, %v2956_v39, -inf }
 0x272   : > { %v1947_v45 = vpop.f32.mrf.mxu0  ;;  %1062 = vmax.xlane.f32.xlu1 %v1061_v0 }
 0x274   : > { %v2960_v63 = vpop.f32.mrf.mxu0 }
 0x275   : > { %v1064_v47 = vsel %vm1027_vm1, %v2960_v63, -inf }
 0x276   : > { %v1950_v18 = vpop.f32.mrf.mxu0 }
 0x278   : > { %v2962_v23 = vpop.f32.mrf.mxu0 }
 0x279   : > { %v1067_v56 = vsel %vm1027_vm1, %v2962_v23, -inf }
 0x27a   : > { %v1951_v25 = vpop.f32.mrf.mxu0 }
 0x27c   : > { %v2964_v51 = vpop.f32.mrf.mxu0 }
 0x27d   : > { %v1070_v16 = vsel %vm1027_vm1, %v2964_v51, -inf }
 0x27e   : > { %v1954_v20 = vpop.f32.mrf.mxu0 }
 0x280   : > { %v968_v57 = vpop.f32.mrf.mxu0 }
 0x282   : > { %v1955_v22 = vpop.f32.mrf.mxu0 }
 0x28c   : > { %v2966_v61 = vpop.f32.mrf.mxu1 }
 0x28d   : > { %v1073_v55 = vsel %vm1027_vm1, %v2966_v61, -inf }
 0x28e   : > { %1074 = vmax.xlane.f32.xlu0 %v1073_v55  ;;  %v1966_v3 = vpop.f32.mrf.mxu1 }
 0x290   : > { %v2970_v32 = vpop.f32.mrf.mxu1 }
 0x291   : > { %v1076_v50 = vsel %vm1027_vm1, %v2970_v32, -inf }
 0x292   : > { %1065 = vmax.xlane.f32.xlu0 %v1064_v47  ;;  %1077 = vmax.xlane.f32.xlu1 %v1076_v50  ;;  %v1967_v37 = vpop.f32.mrf.mxu1 }
 0x294   : > { %v2976_v11 = vpop.f32.mrf.mxu1 }
 0x295   : > { %v1079_v30 = vsel %vm1027_vm1, %v2976_v11, -inf }
 0x296   : > { %1068 = vmax.xlane.f32.xlu1 %v1067_v56  ;;  %1080 = vmax.xlane.f32.xlu0 %v1079_v30  ;;  %v1970_v52 = vpop.f32.mrf.mxu1 }
 0x298   : > { %v2982_v59 = vpop.f32.mrf.mxu1 }
 0x299   : > { %v1082_v53 = vsel %vm1027_vm1, %v2982_v59, -inf }
 0x29a   : > { %1071 = vmax.xlane.f32.xlu0 %v1070_v16  ;;  %1083 = vmax.xlane.f32.xlu1 %v1082_v53  ;;  %v1971_v49 = vpop.f32.mrf.mxu1 }
 0x29c   : > { %v2988_v40 = vpop.f32.mrf.mxu1 }
 0x29d   : > { %v1085_v44 = vsel %vm1027_vm1, %v2988_v40, -inf }
 0x29e   : > { %1086 = vmax.xlane.f32.xlu1 %v1085_v44  ;;  %v1974_v27 = vpop.f32.mrf.mxu1 }
 0x2a0   : > { %v1024_v15 = vpop.f32.mrf.mxu1 }
 0x2a2   : > { %v1975_v29 = vpop.f32.mrf.mxu1 }
 0x2b7   : > { %v1030_v33 = vpop.xlane.xlu0 %1029 }
 0x2b8   : > { %v1088_v5 = vsub.f32 %v2912_v17, %v1030_v33 }
 0x2ba   : > { %v1108_v48 = vmul.f32 1.442695, %v1088_v5 }
 0x2bb   : > { %v1033_v38 = vpop.xlane.xlu0 %1032 }
 0x2bc   : > { %2156 = vpow2.f32 %v1108_v48  ;;  %v1089_v0 = vsub.f32 %v2916_v6, %v1033_v38 }
 0x2be   : > { %v1110_v45 = vmul.f32 1.442695, %v1089_v0 }
 0x2bf   : > { %v1036_v17 = vpop.xlane.xlu0 %1035 }
 0x2c0   : > { %2158 = vpow2.f32 %v1110_v45  ;;  %v1090_v22 = vsub.f32 %v2920_v12, %v1036_v17 }
 0x2c2   : > { %v1112_v3 = vmul.f32 1.442695, %v1090_v22 }
 0x2c9   : > { %v2994_v18 = vpop.eup %2156 }
 0x2ca   : > { %v1148_v25 = vsel %vm1027_vm1, %v2994_v18, 0.0 }
 0x2cb   : > { %1149 = vadd.xlane.f32.xlu0 %v1148_v25 }
 0x2cd   : > { %v2998_v20 = vpop.eup %2158 }
 0x2ce   : > { %v1151_v57 = vsel %vm1027_vm1, %v2998_v20, 0.0 }
 0x2cf   : > { %1152 = vadd.xlane.f32.xlu1 %v1151_v57 }
 0x2d7   : > { %v1045_v55 = vpop.xlane.xlu1 %1044 }
 0x2d8   : > { %v1093_v6 = vsub.f32 %v2928_v24, %v1045_v55 }
 0x2da   : > { %v1118_v47 = vmul.f32 1.442695, %v1093_v6 }
 0x2db   : > { %v1048_v50 = vpop.xlane.xlu1 %1047 }
 0x2dc   : > { %2160 = vpow2.f32 %v1118_v47  ;;  %v1094_v37 = vsub.f32 %v2932_v9, %v1048_v50 }
 0x2dd   : > { %2162 = vpow2.f32 %v1112_v3 }
 0x2de   : > { %v1120_v56 = vmul.f32 1.442695, %v1094_v37 }
 0x2df   : > { %v1039_v30 = vpop.xlane.xlu1 %1038  ;;  %v1051_v52 = vpop.xlane.xlu0 %1050 }
 0x2e0   : > { %2164 = vpow2.f32 %v1120_v56  ;;  %v1091_v16 = vsub.f32 %v2924_v14, %v1039_v30  ;;  %v1095_v53 = vsub.f32 %v2936_v36, %v1051_v52 }
 0x2e2   : > { %v1114_v49 = vmul.f32 1.442695, %v1091_v16  ;;  %v1122_v12 = vmul.f32 1.442695, %v1095_v53 }
 0x2e3   : > { %v1042_v44 = vpop.xlane.xlu0 %1041  ;;  %v1054_v27 = vpop.xlane.xlu1 %1053 }
 0x2e4   : > { %2166 = vpow2.f32 %v1114_v49  ;;  %v1092_v24 = vsub.f32 %v2926_v21, %v1042_v44  ;;  %v1096_v15 = vsub.f32 %v2942_v41, %v1054_v27 }
 0x2e5   : > { %2168 = vpow2.f32 %v1122_v12 }
 0x2e6   : > { %v1116_v9 = vmul.f32 1.442695, %v1092_v24  ;;  %v1124_v29 = vmul.f32 1.442695, %v1096_v15 }
 0x2e7   : > { %v1057_v33 = vpop.xlane.xlu1 %1056 }
 0x2e8   : > { %2170 = vpow2.f32 %v1116_v9  ;;  %v1097_v5 = vsub.f32 %v2948_v19, %v1057_v33 }
 0x2e9   : > { %v3010_v48 = vpop.eup %2160  ;;  %2172 = vpow2.f32 %v1124_v29 }
 0x2ea   : > { %v1126_v14 = vmul.f32 1.442695, %v1097_v5  ;;  %v1163_v36 = vsel %vm1027_vm1, %v3010_v48, 0.0  ;;  %v3014_v38 = vpop.eup %2162 }
 0x2eb   : > { %1164 = vadd.xlane.f32.xlu0 %v1163_v36  ;;  %v1154_v41 = vsel %vm1027_vm1, %v3014_v38, 0.0 }
 0x2ec   : > { %2174 = vpow2.f32 %v1126_v14 }
 0x2ed   : > { %v3016_v21 = vpop.eup %2164 }
 0x2ee   : > { %v1166_v0 = vsel %vm1027_vm1, %v3016_v21, 0.0 }
 0x2ef   : > { %1155 = vadd.xlane.f32.xlu0 %v1154_v41  ;;  %1167 = vadd.xlane.f32.xlu1 %v1166_v0 }
 0x2f1   : > { %v3022_v19 = vpop.eup %2166 }
 0x2f2   : > { %v3024_v45 = vpop.eup %2168  ;;  %v1157_v25 = vsel %vm1027_vm1, %v3022_v19, 0.0 }
 0x2f3   : > { %v1169_v57 = vsel %vm1027_vm1, %v3024_v45, 0.0  ;;  %1158 = vadd.xlane.f32.xlu1 %v1157_v25 }
 0x2f4   : > { %1170 = vadd.xlane.f32.xlu0 %v1169_v57 }
 0x2f5   : > { %v3030_v17 = vpop.eup %2170 }
 0x2f6   : > { %v3032_v22 = vpop.eup %2172  ;;  %v1160_v55 = vsel %vm1027_vm1, %v3030_v17, 0.0 }
 0x2f7   : > { %v1060_v6 = vpop.xlane.xlu0 %1059  ;;  %v1172_v3 = vsel %vm1027_vm1, %v3032_v22, 0.0 }
 0x2f8   : > { %v1098_v47 = vsub.f32 %v2952_v34, %v1060_v6  ;;  %1161 = vadd.xlane.f32.xlu0 %v1160_v55  ;;  %1173 = vadd.xlane.f32.xlu1 %v1172_v3 }
 0x2f9   : > { %v3039_v50 = vpop.eup %2174 }
 0x2fa   : > { %v1128_v37 = vmul.f32 1.442695, %v1098_v47  ;;  %v1175_v56 = vsel %vm1027_vm1, %v3039_v50, 0.0 }
 0x2fb   : > { %v1063_v30 = vpop.xlane.xlu1 %1062 }
 0x2fc   : > { %2176 = vpow2.f32 %v1128_v37  ;;  %v1099_v52 = vsub.f32 %v2956_v39, %v1063_v30  ;;  %1176 = vadd.xlane.f32.xlu1 %v1175_v56 }
 0x2fe   : > { %v1130_v16 = vmul.f32 1.442695, %v1099_v52 }
 0x300   : > { %2178 = vpow2.f32 %v1130_v16 }
 0x309   : > { %v3044_v53 = vpop.eup %2176 }
 0x30a   : > { %v1178_v34 = vsel %vm1027_vm1, %v3044_v53, 0.0 }
 0x30b   : > { %1179 = vadd.xlane.f32.xlu0 %v1178_v34 }
 0x30d   : > { %v3048_v49 = vpop.eup %2178 }
 0x30e   : > { %v1181_v12 = vsel %vm1027_vm1, %v3048_v49, 0.0 }
 0x30f   : > { %1182 = vadd.xlane.f32.xlu1 %v1181_v12 }
 0x317   : > { %v1075_v44 = vpop.xlane.xlu0 %1074 }
 0x318   : > { %v1103_v27 = vsub.f32 %v2966_v61, %v1075_v44 }
 0x31a   : > { %v1138_v24 = vmul.f32 1.442695, %v1103_v27 }
 0x31b   : > { %v1066_v39 = vpop.xlane.xlu0 %1065  ;;  %v1078_v15 = vpop.xlane.xlu1 %1077 }
 0x31c   : > { %2180 = vpow2.f32 %v1138_v24  ;;  %v1100_v9 = vsub.f32 %v2960_v63, %v1066_v39  ;;  %v1104_v29 = vsub.f32 %v2970_v32, %v1078_v15 }
 0x31e   : > { %v1132_v33 = vmul.f32 1.442695, %v1100_v9  ;;  %v1140_v5 = vmul.f32 1.442695, %v1104_v29 }
 0x31f   : > { %v1069_v14 = vpop.xlane.xlu1 %1068  ;;  %v1081_v36 = vpop.xlane.xlu0 %1080 }
 0x320   : > { %2182 = vpow2.f32 %v1132_v33  ;;  %v1101_v41 = vsub.f32 %v2962_v23, %v1069_v14  ;;  %v1105_v0 = vsub.f32 %v2976_v11, %v1081_v36 }
 0x321   : > { %2184 = vpow2.f32 %v1140_v5 }
 0x322   : > { %v1134_v25 = vmul.f32 1.442695, %v1101_v41  ;;  %v1142_v61 = vmul.f32 1.442695, %v1105_v0 }
 0x323   : > { %v1072_v57 = vpop.xlane.xlu0 %1071  ;;  %v1084_v55 = vpop.xlane.xlu1 %1083 }
 0x324   : > { %2186 = vpow2.f32 %v1134_v25  ;;  %v1102_v6 = vsub.f32 %v2964_v51, %v1072_v57  ;;  %v1106_v63 = vsub.f32 %v2982_v59, %v1084_v55 }
 0x325   : > { %2188 = vpow2.f32 %v1142_v61 }
 0x326   : > { %v1136_v32 = vmul.f32 1.442695, %v1102_v6  ;;  %v1144_v3 = vmul.f32 1.442695, %v1106_v63 }
 0x327   : > { %v1087_v47 = vpop.xlane.xlu1 %1086 }
 0x328   : > { %2190 = vpow2.f32 %v1136_v32  ;;  %v1107_v37 = vsub.f32 %v2988_v40, %v1087_v47 }
 0x329   : > { %v3060_v23 = vpop.eup %2180  ;;  %2192 = vpow2.f32 %v1144_v3  ;;  %v3265_v3 = vpack.c.bf16 %v2746_v1, %v2732_v31  ;;  %v3267_v31 = vpack.c.bf16 %v2721_v13, %v2711_v62 }
 0x32a   : > { %v1146_v11 = vmul.f32 1.442695, %v1107_v37  ;;  %v1193_v56 = vsel %vm1027_vm1, %v3060_v23, 0.0 }
 0x32b   : > { %1194 = vadd.xlane.f32.xlu0 %v1193_v56 }
 0x32c   : > { %2194 = vpow2.f32 %v1146_v11 }
 0x32d   : > { %v3064_v30 = vpop.eup %2182 }
 0x32e   : > { %v3066_v51 = vpop.eup %2184  ;;  %v1184_v59 = vsel %vm1027_vm1, %v3064_v30, 0.0 }
 0x32f   : > { %1185 = vadd.xlane.f32.xlu0 %v1184_v59  ;;  %v1196_v40 = vsel %vm1027_vm1, %v3066_v51, 0.0 }
 0x330   : > { %1197 = vadd.xlane.f32.xlu1 %v1196_v40 }
 0x331   : > { %v3072_v52 = vpop.eup %2186 }
 0x332   : > { %v3074_v16 = vpop.eup %2188  ;;  %v1187_v34 = vsel %vm1027_vm1, %v3072_v52, 0.0 }
 0x333   : > { %v1199_v12 = vsel %vm1027_vm1, %v3074_v16, 0.0 }
 0x334   : > { %1200 = vadd.xlane.f32.xlu0 %v1199_v12  ;;  %1188 = vadd.xlane.f32.xlu1 %v1187_v34 }
 0x335   : > { %v3080_v44 = vpop.eup %2190 }
 0x336   : > { %v3082_v27 = vpop.eup %2192  ;;  %v1190_v24 = vsel %vm1027_vm1, %v3080_v44, 0.0 }
 0x337   : > { %v1202_v39 = vsel %vm1027_vm1, %v3082_v27, 0.0 }
 0x338   : > { %1191 = vadd.xlane.f32.xlu0 %v1190_v24  ;;  %1203 = vadd.xlane.f32.xlu1 %v1202_v39 }
 0x339   : > { %v3088_v15 = vpop.eup %2194 }
 0x33a   : > { %v1205_v9 = vsel %vm1027_vm1, %v3088_v15, 0.0 }
 0x33c   : > { %1206 = vadd.xlane.f32.xlu1 %v1205_v9 }
 0x354   : > { %v1150_v29 = vpop.xlane.xlu0 %1149 }
 0x355   : > { %2196 = vrcp.f32 %v1150_v29 }
 0x358   : > { %v1153_v33 = vpop.xlane.xlu1 %1152 }
 0x359   : > { %2198 = vrcp.f32 %v1153_v33 }
 0x362   : > { %v2197_v5 = vpop.eup %2196 }
 0x363   : > { %v1228_v14 = vmul.f32 %v2197_v5, %v1150_v29 }
 0x365   : > { %v1248_v36 = vsub.f32 2.0, %v1228_v14 }
 0x366   : > { %v2199_v41 = vpop.eup %2198 }
 0x367   : > { %v1229_v0 = vmul.f32 %v2199_v41, %v1153_v33  ;;  %v1268_v25 = vmul.f32 %v2197_v5, %v1248_v36 }
 0x369   : > { %v1249_v61 = vsub.f32 2.0, %v1229_v0  ;;  %v1288_v55 = vmul.f32 %v2994_v18, %v1268_v25 }
 0x36b   : > { %v1269_v57 = vmul.f32 %v2199_v41, %v1249_v61 }
 0x36d   : > { %v1289_v6 = vmul.f32 %v2998_v20, %v1269_v57 }
 0x36f   : > { %v1308_v63 = vpack.c.bf16 %v1289_v6, %v1288_v55 }
 0x371   : > { %1985 = vmatmul.mubr.msk.bf16.vlgmr.msra.gmra.mxu0 %vm1027_vm1, %v1308_v63 }
 0x372   : > { %2017 = vmatpush3.bf16.msra.mxu0 %v1331_v60  ;;  %1988 = vmatprep.mubr.msk.bf16.mxu0 %vm2368_vm0, %v2367_v10 }
 0x373   : > { %2018 = vmatprep.subr.bf16.mxu0 %v2367_v10 }
 0x374   : > { %v1165_v32 = vpop.xlane.xlu0 %1164 }
 0x375   : > { %2200 = vrcp.f32 %v1165_v32 }
 0x376   : > { %2019 = vmatpush3.bf16.msra.mxu0 %v3265_v3 }
 0x377   : > { %2020 = vmatprep.subr.bf16.mxu0 %v2367_v10 }
 0x378   : > { %v1156_v18 = vpop.xlane.xlu0 %1155  ;;  %v1168_v20 = vpop.xlane.xlu1 %1167 }
 0x379   : > { %2202 = vrcp.f32 %v1156_v18 }
 0x37a   : > { %2204 = vrcp.f32 %v1168_v20  ;;  %2021 = vmatpush3.bf16.msra.mxu0 %v3266_v35 }
 0x37b   : > { %2022 = vmatprep.subr.bf16.mxu0 %v2367_v10 }
 0x37c   : > { %v1159_v54 = vpop.xlane.xlu1 %1158 }
 0x37d   : > { %v1171_v60 = vpop.xlane.xlu0 %1170  ;;  %2206 = vrcp.f32 %v1159_v54 }
 0x37e   : > { %2208 = vrcp.f32 %v1171_v60  ;;  %2023 = vmatpush3.bf16.msra.mxu0 %v3267_v31 }
 0x381   : > { %v1162_v1 = vpop.xlane.xlu0 %1161  ;;  %v1174_v47 = vpop.xlane.xlu1 %1173 }
 0x382   : > { %v2201_v37 = vpop.eup %2200  ;;  %2210 = vrcp.f32 %v1162_v1 }
 0x383   : > { %v1233_v11 = vmul.f32 %v2201_v37, %v1165_v32  ;;  %2212 = vrcp.f32 %v1174_v47 }
 0x385   : > { %v1177_v56 = vpop.xlane.xlu1 %1176  ;;  %v1253_v42 = vsub.f32 2.0, %v1233_v11 }
 0x386   : > { %v2203_v59 = vpop.eup %2202  ;;  %2214 = vrcp.f32 %v1177_v56 }
 0x387   : > { %v2205_v4 = vpop.eup %2204  ;;  %v1230_v40 = vmul.f32 %v2203_v59, %v1156_v18  ;;  %v1273_v39 = vmul.f32 %v2201_v37, %v1253_v42  ;;  %v3269_v37 = vpack.c.bf16 %v2812_v28, %v2798_v46  ;;  %v3271_v46 = vpack.c.bf16 %v2779_v58, %v2764_v26 }
 0x388   : > { %v1234_v34 = vmul.f32 %v2205_v4, %v1168_v20 }
 0x389   : > { %v1250_v12 = vsub.f32 2.0, %v1230_v40  ;;  %v1293_v36 = vmul.f32 %v3010_v48, %v1273_v39  ;;  %v3268_v48 = vpack.c.bf16 %v2805_v2, %v2788_v8 }
 0x38a   : > { %v2207_v24 = vpop.eup %2206  ;;  %v1254_v9 = vsub.f32 2.0, %v1234_v34 }
 0x38b   : > { %v2209_v29 = vpop.eup %2208  ;;  %v1231_v62 = vmul.f32 %v2207_v24, %v1159_v54  ;;  %v1270_v5 = vmul.f32 %v2203_v59, %v1250_v12 }
 0x38c   : > { %v1274_v13 = vmul.f32 %v2205_v4, %v1254_v9  ;;  %v1235_v33 = vmul.f32 %v2209_v29, %v1171_v60 }
 0x38d   : > { %v1251_v14 = vsub.f32 2.0, %v1231_v62  ;;  %v1290_v63 = vmul.f32 %v3014_v38, %v1270_v5 }
 0x38e   : > { %v1294_v41 = vmul.f32 %v3016_v21, %v1274_v13  ;;  %v1255_v25 = vsub.f32 2.0, %v1235_v33 }
 0x38f   : > { %v2211_v0 = vpop.eup %2210  ;;  %v1271_v61 = vmul.f32 %v2207_v24, %v1251_v14 }
 0x390   : > { %v2213_v57 = vpop.eup %2212  ;;  %v1311_v55 = vpack.c.bf16 %v1294_v41, %v1293_v36  ;;  %v1232_v6 = vmul.f32 %v2211_v0, %v1162_v1  ;;  %v1275_v35 = vmul.f32 %v2209_v29, %v1255_v25 }
 0x391   : > { %v1291_v32 = vmul.f32 %v3022_v19, %v1271_v61  ;;  %v1236_v3 = vmul.f32 %v2213_v57, %v1174_v47 }
 0x392   : > { %v1252_v18 = vsub.f32 2.0, %v1232_v6  ;;  %2005 = vmatmul.mubr.msk.bf16.vlgmr.msra.gmra.mxu1 %vm1027_vm1, %v1311_v55  ;;  %v1295_v8 = vmul.f32 %v3024_v45, %v1275_v35  ;;  %v3270_v45 = vpack.c.bf16 %v2772_v43, %v2755_v7 }
 0x393   : > { %v2215_v20 = vpop.eup %2214  ;;  %v1256_v54 = vsub.f32 2.0, %v1236_v3  ;;  %2037 = vmatpush3.bf16.msra.mxu1 %v3268_v48  ;;  %v1309_v21 = vpack.c.bf16 %v1291_v32, %v1290_v63  ;;  %2008 = vmatprep.mubr.msk.bf16.mxu1 %vm2368_vm0, %v2367_v10 }
 0x394   : > { %v1272_v60 = vmul.f32 %v2211_v0, %v1252_v18  ;;  %v1237_v31 = vmul.f32 %v2215_v20, %v1177_v56  ;;  %v1180_v38 = vpop.xlane.xlu0 %1179  ;;  %2038 = vmatprep.subr.bf16.mxu1 %v2367_v10 }
 0x395   : > { %v1276_v19 = vmul.f32 %v2213_v57, %v1256_v54  ;;  %2216 = vrcp.f32 %v1180_v38  ;;  %1989 = vmatmul.mubr.msk.bf16.gmra.mxu0 %vm1027_vm1, %v1309_v21 }
 0x396   : > { %v1257_v1 = vsub.f32 2.0, %v1237_v31  ;;  %1992 = vmatprep.mubr.msk.bf16.mxu0 %vm2368_vm0, %v2367_v10  ;;  %v1292_v2 = vmul.f32 %v3030_v17, %v1272_v60 }
 0x397   : > { %v1296_v47 = vmul.f32 %v3032_v22, %v1276_v19  ;;  %2039 = vmatpush3.bf16.msra.mxu1 %v3269_v37 }
 0x398   : > { %2040 = vmatprep.subr.bf16.mxu1 %v2367_v10  ;;  %v1183_v11 = vpop.xlane.xlu1 %1182  ;;  %v1277_v56 = vmul.f32 %v2215_v20, %v1257_v1  ;;  %v1310_v42 = vpack.c.bf16 %v1292_v2, %v1292_v2 }
 0x399   : > { %2218 = vrcp.f32 %v1183_v11  ;;  %v1312_v59 = vpack.c.bf16 %v1296_v47, %v1295_v8 }
 0x39a   : > { %v1297_v17 = vmul.f32 %v3039_v50, %v1277_v56 }
 0x39b   : > { %2009 = vmatmul.mubr.msk.bf16.gmra.mxu1 %vm1027_vm1, %v1312_v59 }
 0x39c   : > { %2041 = vmatpush3.bf16.msra.mxu1 %v3270_v45  ;;  %2012 = vmatprep.mubr.msk.bf16.mxu1 %vm2368_vm0, %v2367_v10  ;;  %v1313_v28 = vpack.c.bf16 %v1297_v17, %v1297_v17 }
 0x39d   : > { %2042 = vmatprep.subr.bf16.mxu1 %v2367_v10  ;;  %1993 = vmatmul.mubr.msk.bf16.gmra.mxu0 %vm1027_vm1, %v1310_v42 }
 0x39e   : > { %2024 = vmatprep.mubr.msk.bf16.mxu0 %vm2368_vm0, %v2367_v10 }
 0x3a0   : > { %2043 = vmatpush3.bf16.msra.mxu1 %v3271_v46 }
 0x3a2   : > { %v2217_v22 = vpop.eup %2216 }
 0x3a3   : > { %v1238_v7 = vmul.f32 %v2217_v22, %v1180_v38  ;;  %2013 = vmatmul.mubr.msk.bf16.gmra.mxu1 %vm1027_vm1, %v1313_v28 }
 0x3a4   : > { %2044 = vmatprep.mubr.msk.bf16.mxu1 %vm2368_vm0, %v2367_v10 }
 0x3a5   : > { %v1258_v43 = vsub.f32 2.0, %v1238_v7 }
 0x3a6   : > { %v2219_v50 = vpop.eup %2218 }
 0x3a7   : > { %v1239_v4 = vmul.f32 %v2219_v50, %v1183_v11  ;;  %v1278_v40 = vmul.f32 %v2217_v22, %v1258_v43 }
 0x3a9   : > { %v1259_v34 = vsub.f32 2.0, %v1239_v4  ;;  %v1298_v24 = vmul.f32 %v3044_v53, %v1278_v40 }
 0x3ab   : > { %v1279_v12 = vmul.f32 %v2219_v50, %v1259_v34 }
 0x3ad   : > { %v1299_v39 = vmul.f32 %v3048_v49, %v1279_v12 }
 0x3af   : > { %v1314_v26 = vpack.c.bf16 %v1299_v39, %v1298_v24 }
 0x3b1   : > { %2025 = vmatmul.mubr.msk.bf16.vlgmr.msra.gmra.mxu0 %vm1027_vm1, %v1314_v26 }
 0x3b2   : > { %2028 = vmatprep.mubr.msk.bf16.mxu0 %vm2368_vm0, %v2367_v10 }
 0x3b4   : > { %v1195_v58 = vpop.xlane.xlu0 %1194 }
 0x3b5   : > { %2220 = vrcp.f32 %v1195_v58 }
 0x3b8   : > { %v1186_v9 = vpop.xlane.xlu0 %1185 }
 0x3b9   : > { %2222 = vrcp.f32 %v1186_v9  ;;  %v1198_v29 = vpop.xlane.xlu1 %1197 }
 0x3ba   : > { %2224 = vrcp.f32 %v1198_v29 }
 0x3bd   : > { %v1201_v62 = vpop.xlane.xlu0 %1200  ;;  %v1189_v13 = vpop.xlane.xlu1 %1188 }
 0x3be   : > { %2226 = vrcp.f32 %v1201_v62 }
 0x3bf   : > { %2228 = vrcp.f32 %v1189_v13 }
 0x3c1   : > { %v1192_v33 = vpop.xlane.xlu0 %1191  ;;  %v1204_v53 = vpop.xlane.xlu1 %1203 }
 0x3c2   : > { %v2221_v5 = vpop.eup %2220  ;;  %2230 = vrcp.f32 %v1192_v33 }
 0x3c3   : > { %v1243_v49 = vmul.f32 %v2221_v5, %v1195_v58  ;;  %2232 = vrcp.f32 %v1204_v53 }
 0x3c5   : > { %v1207_v14 = vpop.xlane.xlu1 %1206  ;;  %v1263_v41 = vsub.f32 2.0, %v1243_v49 }
 0x3c6   : > { %v2223_v36 = vpop.eup %2222  ;;  %2234 = vrcp.f32 %v1207_v14 }
 0x3c7   : > { %v2225_v0 = vpop.eup %2224  ;;  %v1240_v25 = vmul.f32 %v2223_v36, %v1186_v9  ;;  %v1283_v57 = vmul.f32 %v2221_v5, %v1263_v41 }
 0x3c8   : > { %v1244_v61 = vmul.f32 %v2225_v0, %v1198_v29 }
 0x3c9   : > { %v1260_v63 = vsub.f32 2.0, %v1240_v25  ;;  %v1303_v35 = vmul.f32 %v3060_v23, %v1283_v57 }
 0x3ca   : > { %v1264_v55 = vsub.f32 2.0, %v1244_v61 }
 0x3cb   : > { %v2227_v6 = vpop.eup %2226  ;;  %v1280_v21 = vmul.f32 %v2223_v36, %v1260_v63 }
 0x3cc   : > { %v2229_v32 = vpop.eup %2228  ;;  %v1284_v3 = vmul.f32 %v2225_v0, %v1264_v55  ;;  %v1245_v18 = vmul.f32 %v2227_v6, %v1201_v62 }
 0x3cd   : > { %v1241_v20 = vmul.f32 %v2229_v32, %v1189_v13  ;;  %v1300_v11 = vmul.f32 %v3064_v30, %v1280_v21 }
 0x3ce   : > { %v1304_v54 = vmul.f32 %v3066_v51, %v1284_v3  ;;  %v1265_v60 = vsub.f32 2.0, %v1245_v18 }
 0x3cf   : > { %v2231_v48 = vpop.eup %2230  ;;  %v1261_v31 = vsub.f32 2.0, %v1241_v20 }
 0x3d0   : > { %v2233_v38 = vpop.eup %2232  ;;  %v1317_v19 = vpack.c.bf16 %v1304_v54, %v1303_v35  ;;  %v1242_v1 = vmul.f32 %v2231_v48, %v1192_v33  ;;  %v1285_v56 = vmul.f32 %v2227_v6, %v1265_v60 }
 0x3d1   : > { %v1281_v8 = vmul.f32 %v2229_v32, %v1261_v31  ;;  %v1246_v2 = vmul.f32 %v2233_v38, %v1204_v53 }
 0x3d2   : > { %v1262_v47 = vsub.f32 2.0, %v1242_v1  ;;  %2045 = vmatmul.mubr.msk.bf16.vlgmr.msra.gmra.mxu1 %vm1027_vm1, %v1317_v19  ;;  %v1305_v28 = vmul.f32 %v3074_v16, %v1285_v56 }
 0x3d3   : > { %v2235_v37 = vpop.eup %2234  ;;  %v1301_v23 = vmul.f32 %v3072_v52, %v1281_v8  ;;  %v1266_v59 = vsub.f32 2.0, %v1246_v2  ;;  %2048 = vmatprep.mubr.msk.bf16.mxu1 %vm2368_vm0, %v2367_v10 }
 0x3d4   : > { %v1247_v51 = vmul.f32 %v2235_v37, %v1207_v14  ;;  %v1282_v42 = vmul.f32 %v2231_v48, %v1262_v47 }
 0x3d5   : > { %v1286_v45 = vmul.f32 %v2233_v38, %v1266_v59  ;;  %v1315_v17 = vpack.c.bf16 %v1301_v23, %v1300_v11 }
 0x3d6   : > { %v1267_v46 = vsub.f32 2.0, %v1247_v51  ;;  %v1302_v30 = vmul.f32 %v3080_v44, %v1282_v42 }
 0x3d7   : > { %v1306_v22 = vmul.f32 %v3082_v27, %v1286_v45  ;;  %2029 = vmatmul.mubr.msk.bf16.gmra.mxu0 %vm1027_vm1, %v1315_v17 }
 0x3d8   : > { %2032 = vmatprep.mubr.msk.bf16.mxu0 %vm2368_vm0, %v2367_v10  ;;  %v1287_v52 = vmul.f32 %v2235_v37, %v1267_v46  ;;  %v1316_v43 = vpack.c.bf16 %v1302_v30, %v1302_v30 }
 0x3d9   : > { %v1318_v7 = vpack.c.bf16 %v1306_v22, %v1305_v28 }
 0x3da   : > { %v1307_v50 = vmul.f32 %v3088_v15, %v1287_v52 }
 0x3db   : > { %2049 = vmatmul.mubr.msk.bf16.gmra.mxu1 %vm1027_vm1, %v1318_v7 }
 0x3dc   : > { %2052 = vmatprep.mubr.msk.bf16.mxu1 %vm2368_vm0, %v2367_v10  ;;  %v1319_v16 = vpack.c.bf16 %v1307_v50, %v1307_v50 }
 0x3df   : > { %2033 = vmatmul.mubr.msk.bf16.gmra.mxu0 %vm1027_vm1, %v1316_v43 }
 0x3e3   : > { %2053 = vmatmul.mubr.msk.bf16.gmra.mxu1 %vm1027_vm1, %v1319_v16 }
 0x431   : > { %v1379_v27 = vpop.f32.mrf.mxu0 }
 0x432   : > { %1596 = vst [vmem:[%s3175_s22] sm:$0xff] %v1379_v27 }
 0x433   : > { %v1986_v10 = vpop.f32.mrf.mxu0 }
 0x435   : > { %v1382_v44 = vpop.f32.mrf.mxu0 }
 0x436   : > { %1597 = vst [vmem:[%s3175_s22 + $0x8] sm:$0xff] %v1382_v44 }
 0x437   : > { %v1987_v15 = vpop.f32.mrf.mxu0 }
 0x452   : > { %v1444_v4 = vpop.f32.mrf.mxu1 }
 0x453   : > { %1601 = vst [vmem:[%s3175_s22 + $0x28] sm:$0xff] %v1444_v4 }
 0x454   : > { %v2006_v40 = vpop.f32.mrf.mxu1 }
 0x455   : > { %v1387_v34 = vpop.f32.mrf.mxu0 }
 0x456   : > { %1598 = vst [vmem:[%s3175_s22 + $0x10] sm:$0xff] %v1387_v34  ;;  %v1447_v12 = vpop.f32.mrf.mxu1 }
 0x457   : > { %1602 = vst [vmem:[%s3175_s22 + $0x30] sm:$0xff] %v1447_v12  ;;  %v1990_v24 = vpop.f32.mrf.mxu0 }
 0x458   : > { %v2007_v39 = vpop.f32.mrf.mxu1 }
 0x459   : > { %v1390_v26 = vpop.f32.mrf.mxu0 }
 0x45a   : > { %1599 = vst [vmem:[%s3175_s22 + $0x18] sm:$0xff] %v1390_v26 }
 0x45b   : > { %v1452_v58 = vpop.f32.mrf.mxu1  ;;  %v1991_v9 = vpop.f32.mrf.mxu0 }
 0x45c   : > { %1603 = vst [vmem:[%s3175_s22 + $0x38] sm:$0xff] %v1452_v58 }
 0x45d   : > { %v2010_v29 = vpop.f32.mrf.mxu1  ;;  %v1395_v62 = vpop.f32.mrf.mxu0 }
 0x45e   : > { %1600 = vst [vmem:[%s3175_s22 + $0x20] sm:$0xff] %v1395_v62 }
 0x45f   : > { %v1455_v13 = vpop.f32.mrf.mxu1  ;;  %v1994_v33 = vpop.f32.mrf.mxu0 }
 0x460   : > { %1604 = vst [vmem:[%s3175_s22 + $0x40] sm:$0xff] %v1455_v13 }
 0x461   : > { %v2011_v53 = vpop.f32.mrf.mxu1  ;;  %v1398_v5 = vpop.f32.mrf.mxu0 }
 0x463   : > { %v1460_v49 = vpop.f32.mrf.mxu1  ;;  %v1995_v14 = vpop.f32.mrf.mxu0 }
 0x464   : > { %1605 = vst [vmem:[%s3175_s22 + $0x48] sm:$0xff] %v1460_v49 }
 0x465   : > { %v2014_v36 = vpop.f32.mrf.mxu1 }
 0x467   : > { %v1463_v41 = vpop.f32.mrf.mxu1 }
 0x469   : > { %v2015_v0 = vpop.f32.mrf.mxu1 }
 0x471   : > { %v1509_v25 = vpop.f32.mrf.mxu0 }
 0x472   : > { %1606 = vst [vmem:[%s3175_s22 + $0x50] sm:$0xff] %v1509_v25 }
 0x473   : > { %v2026_v61 = vpop.f32.mrf.mxu0 }
 0x475   : > { %v1512_v57 = vpop.f32.mrf.mxu0 }
 0x476   : > { %1607 = vst [vmem:[%s3175_s22 + $0x58] sm:$0xff] %v1512_v57 }
 0x477   : > { %v2027_v55 = vpop.f32.mrf.mxu0 }
 0x492   : > { %v1574_v6 = vpop.f32.mrf.mxu1 }
 0x493   : > { %1611 = vst [vmem:[%s3175_s22 + $0x78] sm:$0xff] %v1574_v6 }
 0x494   : > { %v2046_v63 = vpop.f32.mrf.mxu1 }
 0x496   : > { %v1577_v32 = vpop.f32.mrf.mxu1 }
 0x497   : > { %v1517_v3 = vpop.f32.mrf.mxu0  ;;  %1612 = vst [vmem:[%s3175_s22 + $0x80] sm:$0xff] %v1577_v32 }
 0x498   : > { %1608 = vst [vmem:[%s3175_s22 + $0x60] sm:$0xff] %v1517_v3  ;;  %v2047_v18 = vpop.f32.mrf.mxu1 }
 0x499   : > { %v2030_v20 = vpop.f32.mrf.mxu0 }
 0x49b   : > { %v1520_v35 = vpop.f32.mrf.mxu0  ;;  %v1582_v54 = vpop.f32.mrf.mxu1 }
 0x49c   : > { %1609 = vst [vmem:[%s3175_s22 + $0x68] sm:$0xff] %v1520_v35  ;;  %1613 = vst [vmem:[%s3175_s22 + $0x88] sm:$0xff] %v1582_v54 }
 0x49d   : > { %v2031_v48 = vpop.f32.mrf.mxu0  ;;  %v2050_v21 = vpop.f32.mrf.mxu1 }
 0x49f   : > { %v1525_v60 = vpop.f32.mrf.mxu0  ;;  %v1585_v31 = vpop.f32.mrf.mxu1 }
 0x4a0   : > { %1610 = vst [vmem:[%s3175_s22 + $0x70] sm:$0xff] %v1525_v60  ;;  %1614 = vst [vmem:[%s3175_s22 + $0x90] sm:$0xff] %v1585_v31 }
 0x4a1   : > { %v2034_v38 = vpop.f32.mrf.mxu0  ;;  %v2051_v19 = vpop.f32.mrf.mxu1 }
 0x4a3   : > { %v1528_v1 = vpop.f32.mrf.mxu0  ;;  %v1590_v8 = vpop.f32.mrf.mxu1 }
 0x4a4   : > { %1615 = vst [vmem:[%s3175_s22 + $0x98] sm:$0xff] %v1590_v8 }
 0x4a5   : > { %v2035_v2 = vpop.f32.mrf.mxu0  ;;  %v2054_v47 = vpop.f32.mrf.mxu1 }
 0x4a6   : > { %2303 = shalt.err (!%p2300_p0)
}
 0x4a7   : > { %s2304_s21 = scalar_lea.hbm %s3201_s7, 2560  ;;  %s2308_s29 = scalar_lea.hbm %s3249_s3, 10240 }
 0x4a8   : > { %p2305_p5 = scmp.ne.s32.totalorder %s3201_s7, %s2304_s21  ;;  %p2309_p4 = scmp.lt.s32.totalorder %s3201_s7, %s3249_s3 }
 0x4a9   : > { %p2310_p6 = scmp.lt.s32.totalorder %s2308_s29, %s2304_s21 }
 0x4aa   : > { %p2306_p9 = pnand %p2305_p5, %p3272_p10 }
 0x4ab   : > { %p2311_p8 = por %p2310_p6, %p2309_p4 }
 0x4ac   : > { %p2307_p1 = pneg %p2306_p9 }
 0x4ae   : > { %p2312_p3 = pnand %p2311_p8, %p2307_p1 }
 0x4b0   : > { %2315 = shalt.err (!%p2312_p3)
}
 0x4b1   : > { %s2370_s17 = smov 128   ;;  %s2371_s22 = smov 8   ;;  %v1593_v37 = vpop.f32.mrf.mxu1 }
 0x4b2   : > { %2064 = dma.vmem_to_hbm [thread:$0]  (%p3272_p10), %s3203_s25, 2560, %s3201_s7, %s1617_s16, %s2370_s17, %s2370_s17, %s2371_s22  }
 0x4b3   : > { %v2055_v11 = vpop.f32.mrf.mxu1 }
 0x4b4 PF: > { %p2081_p7 = scmp.ge.s32.totalorder %s2358_s15, 2  ;;  %s1646_s23 = sand.u32 1, %s2346_s12  }
 0x4b5   : > { %p3273_p11 = scmp.ne.s32.totalorder %s3255_s19, 0  ;;  %s1647_s30 = scalar_lea.sflag [#allocation4], %s1646_s23 }
 0x4b7   : > { %p2075_p12 = pnand %p2081_p7, %p3273_p11 }
 0x4b9   : > { %p2076_p2 = pneg %p2075_p12 }
 0x4bb   : > { %2341 = dma.done.wait (%p2076_p2), %s1647_s30, 2560  }
 0x4bc   : > { %2343 = vsyncadd (%p2076_p2), %s1647_s30, 4294964736  ;;  %p17_p10 = scmp.ge.s32.totalorder %s2445_s24, 6   ;;  %s3274_s12 = smov %s2350_s13 }
 0x4bd   : > { %s3275_s13 = smov %s2354_s14  ;;  %s3276_s14 = smov %s2462_s5 }
 0x4be   : > { %s3277_s15 = smov %s2445_s24  ;;  %19 = sbr.rel (!%p17_p10) target bundleno = 6 (0x6), region = 81 }
 0x4c3   :  { %1652 = vsyncpa [#allocation3], 1 }
 0x4c4   :  { %1654 = vsyncpa [#allocation3 + $0x1], 1 }
 0x4c5   :  { %1655 = vsyncpa [#allocation6], 1 }
 0x4c6   :  { %1656 = vsyncpa [#allocation4], 1 }
 0x4c7   :  { %1658 = vsyncpa [#allocation4 + $0x1], 1 }

</bundles_post_ra>
